<compile_context>
chip_gen: v6e
topology: v6e:2x2x1
jax: 0.10.0
libtpu: 0.0.40
codegen_flags: <defaults>
</compile_context>

<pallas_src>
import functools

import jax
import jax.numpy as jnp
from jax import lax
from jax.experimental import pallas as pl
from jax.experimental.pallas import tpu as pltpu

NEG_SLOPE = 0.01     # nn.LeakyReLU default
BN_EPS = 1e-5        # nn.BatchNorm2d default


def _cdiv(a, b):
    return -(-a // b)


def _vmem_capacity_bytes():
    try:
        return int(pltpu.get_tpu_info().vmem_capacity_bytes)
    except Exception:
        return 64 * 1024 * 1024  # conservative (v7x per-core VMEM)


def _pick_tile_ho(n, ho, wo, c, vmem_cap):
    """Conv-output rows per grid block, sized from the real VMEM budget."""
    # rough per-output-row VMEM footprint of one grid step: double-buffered
    # bf16 input block (~16*wo*c) + bf16 y block (~4) + f32 accumulator (~4)
    # + im2col slab / tap copies (~18) + slack.
    bytes_per_row = 48 * wo * c + 512
    budget = min(vmem_cap // 4, 32 * 1024 * 1024)
    t = max(1, min(ho, budget // bytes_per_row))
    # keep >= 2 grid blocks so the "parallel" grid axes can feed both
    # TensorCores on v7x (harmless on v5e/v6e).
    if n * _cdiv(ho, t) < 2 and ho >= 2:
        t = _cdiv(ho, 2)
    return t


def _conv_stats_kernel(main_ref, halo_ref, w_ref, y_ref, s_ref, *,
                       tile_ho, wo, c, ho, aligned, masked):
    """Stride-2 3x3 conv on one (batch, row-tile) block + per-tile channel stats.

    main_ref: (4, tile_ho, wo+1, c)  bf16  even/odd (H, W) phases of the padded
                                           input rows owned by this tile
    halo_ref: (4, 1, wo+1, c)        bf16  the single halo phase-row below the tile
    w_ref:    (9c, c) or (3, 3, c, c) bf16 conv weights
    y_ref:    (tile_ho*wo, c)        bf16  conv output of this tile (single store)
    s_ref:    (2, c)                 f32   [sum(y), sum(y*y)] over *valid* rows
    """
    r = tile_ho * wo

    def tap(kh, kw):
        idx = (kh % 2) * 2 + (kw % 2)          # (H, W) phase of this tap
        dw = kw // 2                           # column offset within the phase
        cols = slice(dw, dw + wo)
        if kh // 2 == 0:
            t = main_ref[idx, :, cols, :]
        elif tile_ho == 1:
            t = halo_ref[idx, :, cols, :]
        else:  # rows 1..tile_ho-1 of this tile + the halo row below it
            t = jnp.concatenate(
                [main_ref[idx, 1:, cols, :], halo_ref[idx, :, cols, :]], axis=0)
        return t.reshape(r, c)

    if aligned:
        # lane-aligned channel count: one (r, 9c) x (9c, c) contraction keeps the
        # accumulation inside the MXU and fills its 256-deep contraction dim.
        slab = jnp.concatenate([tap(kh, kw) for kh in range(3) for kw in range(3)],
                               axis=1)
        acc = jnp.dot(slab, w_ref[...], preferred_element_type=jnp.float32)
    else:
        # unaligned C: value-accumulate 9 small dots (no zeros-init, no RMW of
        # the output ref, single store below).
        acc = None
        for kh in range(3):
            for kw in range(3):
                d = jnp.dot(tap(kh, kw), w_ref[kh, kw],
                            preferred_element_type=jnp.float32)
                acc = d if acc is None else acc + d

    # per-channel sum / sum-of-squares over valid rows only (ragged last tile's
    # pad rows are masked out of the statistics).
    if masked:
        valid_rows = ho - pl.program_id(1) * tile_ho
        row = lax.broadcasted_iota(jnp.int32, (r, 1), 0)
        acc_s = jnp.where(row < valid_rows * wo, acc, 0.0)
    else:
        acc_s = acc
    s_ref[0:1, :] = jnp.sum(acc_s, axis=0, keepdims=True)
    s_ref[1:2, :] = jnp.sum(acc_s * acc_s, axis=0, keepdims=True)

    # single bf16 store of the conv output (stats above stay f32).
    y_ref[...] = acc.astype(y_ref.dtype)


def downsample_forward(x, weight, gamma, beta, *, tile_ho=None):
    """x: (N, C, H, W) f32; weight: (C, C, 3, 3); gamma/beta: (C,). Returns NCHW f32."""
    N, C, H, W = x.shape
    assert H >= 2 and W >= 2, "reflect padding of 1 needs H, W >= 2"
    Ho = (H - 1) // 2 + 1
    Wo = (W - 1) // 2 + 1

    vmem_cap = _vmem_capacity_bytes()
    if tile_ho is None:
        tile_ho = _pick_tile_ho(N, Ho, Wo, C, vmem_cap)
    n_tiles = _cdiv(Ho, tile_ho)
    Ho_pad = n_tiles * tile_ho
    R = tile_ho * Wo
    aligned = (C % 128 == 0)
    masked = (Ho_pad != Ho)

    # ---- wrapper preprocessing (few cheap XLA passes, no gathers) -------------
    # bf16 cast -> NCHW->NHWC -> reflect pad -> zero pad so each even/odd phase
    # has exactly (Ho_pad+1, Wo+1) entries -> 4-way phase split with strided
    # slices.  Halo rows are NOT duplicated here; the kernel reads them via a
    # second, 1-row BlockSpec on the same array.
    x_nhwc = jnp.transpose(x.astype(jnp.bfloat16), (0, 2, 3, 1))
    xp = jnp.pad(x_nhwc, ((0, 0), (1, 1), (1, 1), (0, 0)), mode="reflect")
    Hp, Wp = 2 * (Ho_pad + 1), 2 * (Wo + 1)
    xp = jnp.pad(xp, ((0, 0), (0, Hp - (H + 2)), (0, Wp - (W + 2)), (0, 0)))
    xph = jnp.stack([xp[:, ph::2, pw::2, :] for ph in (0, 1) for pw in (0, 1)],
                    axis=1)                        # (N, 4, Ho_pad+1, Wo+1, C) bf16

    if aligned:
        w_mat = jnp.transpose(weight, (2, 3, 1, 0)).reshape(9 * C, C)
        w_mat = w_mat.astype(jnp.bfloat16)                       # (9C, C)
        w_spec = pl.BlockSpec((9 * C, C), lambda n, t: (0, 0))
    else:
        w_mat = jnp.transpose(weight, (2, 3, 1, 0)).astype(jnp.bfloat16)  # (3,3,C,C)
        w_spec = pl.BlockSpec((3, 3, C, C), lambda n, t: (0, 0, 0, 0))

    # explicit VMEM limit from the actual working set (headroom on v7x's 64 MiB).
    est = 48 * R * C + 36 * C * C + (1 << 20)
    vmem_limit = int(min(vmem_cap, max(2 * est, 32 * 1024 * 1024)))
    cparams = pltpu.CompilerParams(
        dimension_semantics=("parallel", "parallel"),
        vmem_limit_bytes=vmem_limit)

    kernel = functools.partial(_conv_stats_kernel, tile_ho=tile_ho, wo=Wo, c=C,
                               ho=Ho, aligned=aligned, masked=masked)

    y, stats = pl.pallas_call(
        kernel,
        out_shape=[jax.ShapeDtypeStruct((N, n_tiles, R, C), jnp.bfloat16),
                   jax.ShapeDtypeStruct((N, n_tiles, 2, C), jnp.float32)],
        grid=(N, n_tiles),
        in_specs=[
            pl.BlockSpec((None, 4, tile_ho, Wo + 1, C),
                         lambda n, t: (n, 0, t, 0, 0)),
            pl.BlockSpec((None, 4, 1, Wo + 1, C),
                         lambda n, t: (n, 0, (t + 1) * tile_ho, 0, 0)),
            w_spec,
        ],
        out_specs=[
            pl.BlockSpec((None, None, R, C), lambda n, t: (n, t, 0, 0)),
            pl.BlockSpec((None, None, 2, C), lambda n, t: (n, t, 0, 0)),
        ],
        compiler_params=cparams,
    )(xph, xph, w_mat)

    # ---- tiny XLA epilogue: train-mode BN stats; affine + LeakyReLU fused into
    # ---- the final NHWC->NCHW transpose (no second Pallas pass).
    m_total = float(N * Ho * Wo)
    sums = jnp.sum(stats, axis=(0, 1))                          # (2, C) f32
    mean = sums[0] / m_total
    var = jnp.maximum(sums[1] / m_total - mean * mean, 0.0)     # biased variance
    scale = gamma.astype(jnp.float32) * lax.rsqrt(var + BN_EPS)
    shift = beta.astype(jnp.float32) - mean * scale

    y4 = y.reshape(N, Ho_pad, Wo, C)[:, :Ho]                    # drop padded rows
    z = y4.astype(jnp.float32) * scale + shift
    z = jnp.where(z >= 0, z, NEG_SLOPE * z)
    return jnp.transpose(z, (0, 3, 1, 2))                       # NCHW


def _reference_forward(x, weight, gamma, beta):
    """Pure-JAX f32 reference mirroring the PyTorch module (train-mode BN)."""
    xp = jnp.pad(x, ((0, 0), (0, 0), (1, 1), (1, 1)), mode="reflect")
    y = lax.conv_general_dilated(
        xp, weight, window_strides=(2, 2), padding="VALID",
        dimension_numbers=("NCHW", "OIHW", "NCHW"),
        precision=lax.Precision.HIGHEST)
    mean = jnp.mean(y, axis=(0, 2, 3), keepdims=True)
    var = jnp.mean(jnp.square(y - mean), axis=(0, 2, 3), keepdims=True)
    yn = (y - mean) * lax.rsqrt(var + BN_EPS)
    yn = yn * gamma.reshape(1, -1, 1, 1) + beta.reshape(1, -1, 1, 1)
    return jnp.where(yn >= 0, yn, NEG_SLOPE * yn)


if __name__ == "__main__":
    key = jax.random.PRNGKey(0)

    configs = [
        # (N, C, H, W, forced tile_ho)
        (2, 4, 16, 16, None),   # even spatial dims, unaligned C (9-dot path)
        (2, 4, 15, 15, 3),      # odd dims + tile that does not divide Ho (masked stats)
        (1, 128, 8, 8, None),   # lane-aligned C -> single (R,9C)x(9C,C) MXU path
    ]
    for i, (N, C, H, W, th) in enumerate(configs):
        kx, kw_, kg, kb = jax.random.split(jax.random.fold_in(key, i), 4)
        x = jax.random.normal(kx, (N, C, H, W), dtype=jnp.float32)
        weight = jax.random.normal(kw_, (C, C, 3, 3), dtype=jnp.float32) * (
            0.3 / (3.0 * C ** 0.5))
        gamma = 1.0 + 0.1 * jax.random.normal(kg, (C,), dtype=jnp.float32)
        beta = 0.1 * jax.random.normal(kb, (C,), dtype=jnp.float32)

        fwd = jax.jit(functools.partial(downsample_forward, tile_ho=th))
        out = jax.block_until_ready(fwd(x, weight, gamma, beta))

        ref = _reference_forward(x, weight, gamma, beta)
        Ho, Wo = (H - 1) // 2 + 1, (W - 1) // 2 + 1
        assert out.shape == (N, C, Ho, Wo), (i, out.shape)
        assert bool(jnp.all(jnp.isfinite(out))), i
        max_err = float(jnp.max(jnp.abs(out - ref)))
        # bf16 conv inputs / bf16 y vs f32 reference -> loosened tolerance
        assert jnp.allclose(out, ref, rtol=5e-2, atol=5e-2), (i, max_err)

    print("KERNEL_OK")
</pallas_src>

<mosaic_0001>
module attributes {stable_mosaic.version = 11 : i64} {
  func.func @_conv_stats_kernel(%arg0: i32, %arg1: i32, %arg2: memref<1x4x8x9x4xbf16, #tpu.memory_space<vmem>>, %arg3: memref<1x4x1x9x4xbf16, #tpu.memory_space<vmem>>, %arg4: memref<3x3x4x4xbf16, #tpu.memory_space<vmem>>, %arg5: memref<1x1x64x4xbf16, #tpu.memory_space<vmem>>, %arg6: memref<1x1x2x4xf32, #tpu.memory_space<vmem>>) attributes {dimension_semantics = [#tpu.dimension_semantics<parallel>, #tpu.dimension_semantics<parallel>], iteration_bounds = array<i64: 2, 1>, scalar_prefetch = 0 : i64, scratch_operands = 0 : i64, tpu.core_type = #tpu.core_type<tc>, window_params = [{transform_indices = @transform_0, window_bounds = array<i64: 1, 4, 8, 9, 4>}, {transform_indices = @transform_1, window_bounds = array<i64: 1, 4, 1, 9, 4>}, {pipeline_mode = #tpu.pipeline_mode<synchronous>, transform_indices = @transform_2, window_bounds = array<i64: 3, 3, 4, 4>}, {transform_indices = @transform_3, window_bounds = array<i64: 1, 1, 64, 4>}, {transform_indices = @transform_4, window_bounds = array<i64: 1, 1, 2, 4>}]} {
    %c0 = arith.constant 0 : index
    %c0_0 = arith.constant 0 : index
    %c0_1 = arith.constant 0 : index
    %c0_2 = arith.constant 0 : index
    %c0_3 = arith.constant 0 : index
    %0 = vector.load %arg2[%c0, %c0_0, %c0_1, %c0_2, %c0_3] : memref<1x4x8x9x4xbf16, #tpu.memory_space<vmem>>, vector<1x1x8x8x4xbf16>
    %1 = vector.shape_cast %0 : vector<1x1x8x8x4xbf16> to vector<8x8x4xbf16>
    %2 = vector.shape_cast %1 : vector<8x8x4xbf16> to vector<64x4xbf16>
    %c0_4 = arith.constant 0 : index
    %c0_5 = arith.constant 0 : index
    %c0_6 = arith.constant 0 : index
    %c0_7 = arith.constant 0 : index
    %3 = vector.load %arg4[%c0_4, %c0_5, %c0_6, %c0_7] : memref<3x3x4x4xbf16, #tpu.memory_space<vmem>>, vector<1x1x4x4xbf16>
    %4 = vector.shape_cast %3 : vector<1x1x4x4xbf16> to vector<4x4xbf16>
    %cst = arith.constant dense<0.000000e+00> : vector<64x4xf32>
    %5 = tpu.matmul %2, %4, %cst {dimension_numbers = #tpu.dot_dimension_numbers<[1], [0], [0], [1], [0, 0, 1, 1], [], []>} : vector<64x4xbf16>, vector<4x4xbf16>, vector<64x4xf32> -> vector<64x4xf32>
    %c0_8 = arith.constant 0 : index
    %c1 = arith.constant 1 : index
    %c0_9 = arith.constant 0 : index
    %c0_10 = arith.constant 0 : index
    %c0_11 = arith.constant 0 : index
    %6 = vector.load %arg2[%c0_8, %c1, %c0_9, %c0_10, %c0_11] : memref<1x4x8x9x4xbf16, #tpu.memory_space<vmem>>, vector<1x1x8x8x4xbf16>
    %7 = vector.shape_cast %6 : vector<1x1x8x8x4xbf16> to vector<8x8x4xbf16>
    %8 = vector.shape_cast %7 : vector<8x8x4xbf16> to vector<64x4xbf16>
    %c0_12 = arith.constant 0 : index
    %c1_13 = arith.constant 1 : index
    %c0_14 = arith.constant 0 : index
    %c0_15 = arith.constant 0 : index
    %9 = vector.load %arg4[%c0_12, %c1_13, %c0_14, %c0_15] : memref<3x3x4x4xbf16, #tpu.memory_space<vmem>>, vector<1x1x4x4xbf16>
    %10 = vector.shape_cast %9 : vector<1x1x4x4xbf16> to vector<4x4xbf16>
    %cst_16 = arith.constant dense<0.000000e+00> : vector<64x4xf32>
    %11 = tpu.matmul %8, %10, %cst_16 {dimension_numbers = #tpu.dot_dimension_numbers<[1], [0], [0], [1], [0, 0, 1, 1], [], []>} : vector<64x4xbf16>, vector<4x4xbf16>, vector<64x4xf32> -> vector<64x4xf32>
    %12 = arith.addf %5, %11 : vector<64x4xf32>
    %c0_17 = arith.constant 0 : index
    %c0_18 = arith.constant 0 : index
    %c0_19 = arith.constant 0 : index
    %c1_20 = arith.constant 1 : index
    %c0_21 = arith.constant 0 : index
    %13 = vector.load %arg2[%c0_17, %c0_18, %c0_19, %c1_20, %c0_21] : memref<1x4x8x9x4xbf16, #tpu.memory_space<vmem>>, vector<1x1x8x8x4xbf16>
    %14 = vector.shape_cast %13 : vector<1x1x8x8x4xbf16> to vector<8x8x4xbf16>
    %15 = vector.shape_cast %14 : vector<8x8x4xbf16> to vector<64x4xbf16>
    %c0_22 = arith.constant 0 : index
    %c2 = arith.constant 2 : index
    %c0_23 = arith.constant 0 : index
    %c0_24 = arith.constant 0 : index
    %16 = vector.load %arg4[%c0_22, %c2, %c0_23, %c0_24] : memref<3x3x4x4xbf16, #tpu.memory_space<vmem>>, vector<1x1x4x4xbf16>
    %17 = vector.shape_cast %16 : vector<1x1x4x4xbf16> to vector<4x4xbf16>
    %cst_25 = arith.constant dense<0.000000e+00> : vector<64x4xf32>
    %18 = tpu.matmul %15, %17, %cst_25 {dimension_numbers = #tpu.dot_dimension_numbers<[1], [0], [0], [1], [0, 0, 1, 1], [], []>} : vector<64x4xbf16>, vector<4x4xbf16>, vector<64x4xf32> -> vector<64x4xf32>
    %19 = arith.addf %12, %18 : vector<64x4xf32>
    %c0_26 = arith.constant 0 : index
    %c2_27 = arith.constant 2 : index
    %c0_28 = arith.constant 0 : index
    %c0_29 = arith.constant 0 : index
    %c0_30 = arith.constant 0 : index
    %20 = vector.load %arg2[%c0_26, %c2_27, %c0_28, %c0_29, %c0_30] : memref<1x4x8x9x4xbf16, #tpu.memory_space<vmem>>, vector<1x1x8x8x4xbf16>
    %21 = vector.shape_cast %20 : vector<1x1x8x8x4xbf16> to vector<8x8x4xbf16>
    %22 = vector.shape_cast %21 : vector<8x8x4xbf16> to vector<64x4xbf16>
    %c1_31 = arith.constant 1 : index
    %c0_32 = arith.constant 0 : index
    %c0_33 = arith.constant 0 : index
    %c0_34 = arith.constant 0 : index
    %23 = vector.load %arg4[%c1_31, %c0_32, %c0_33, %c0_34] : memref<3x3x4x4xbf16, #tpu.memory_space<vmem>>, vector<1x1x4x4xbf16>
    %24 = vector.shape_cast %23 : vector<1x1x4x4xbf16> to vector<4x4xbf16>
    %cst_35 = arith.constant dense<0.000000e+00> : vector<64x4xf32>
    %25 = tpu.matmul %22, %24, %cst_35 {dimension_numbers = #tpu.dot_dimension_numbers<[1], [0], [0], [1], [0, 0, 1, 1], [], []>} : vector<64x4xbf16>, vector<4x4xbf16>, vector<64x4xf32> -> vector<64x4xf32>
    %26 = arith.addf %19, %25 : vector<64x4xf32>
    %c0_36 = arith.constant 0 : index
    %c3 = arith.constant 3 : index
    %c0_37 = arith.constant 0 : index
    %c0_38 = arith.constant 0 : index
    %c0_39 = arith.constant 0 : index
    %27 = vector.load %arg2[%c0_36, %c3, %c0_37, %c0_38, %c0_39] : memref<1x4x8x9x4xbf16, #tpu.memory_space<vmem>>, vector<1x1x8x8x4xbf16>
    %28 = vector.shape_cast %27 : vector<1x1x8x8x4xbf16> to vector<8x8x4xbf16>
    %29 = vector.shape_cast %28 : vector<8x8x4xbf16> to vector<64x4xbf16>
    %c1_40 = arith.constant 1 : index
    %c1_41 = arith.constant 1 : index
    %c0_42 = arith.constant 0 : index
    %c0_43 = arith.constant 0 : index
    %30 = vector.load %arg4[%c1_40, %c1_41, %c0_42, %c0_43] : memref<3x3x4x4xbf16, #tpu.memory_space<vmem>>, vector<1x1x4x4xbf16>
    %31 = vector.shape_cast %30 : vector<1x1x4x4xbf16> to vector<4x4xbf16>
    %cst_44 = arith.constant dense<0.000000e+00> : vector<64x4xf32>
    %32 = tpu.matmul %29, %31, %cst_44 {dimension_numbers = #tpu.dot_dimension_numbers<[1], [0], [0], [1], [0, 0, 1, 1], [], []>} : vector<64x4xbf16>, vector<4x4xbf16>, vector<64x4xf32> -> vector<64x4xf32>
    %33 = arith.addf %26, %32 : vector<64x4xf32>
    %c0_45 = arith.constant 0 : index
    %c2_46 = arith.constant 2 : index
    %c0_47 = arith.constant 0 : index
    %c1_48 = arith.constant 1 : index
    %c0_49 = arith.constant 0 : index
    %34 = vector.load %arg2[%c0_45, %c2_46, %c0_47, %c1_48, %c0_49] : memref<1x4x8x9x4xbf16, #tpu.memory_space<vmem>>, vector<1x1x8x8x4xbf16>
    %35 = vector.shape_cast %34 : vector<1x1x8x8x4xbf16> to vector<8x8x4xbf16>
    %36 = vector.shape_cast %35 : vector<8x8x4xbf16> to vector<64x4xbf16>
    %c1_50 = arith.constant 1 : index
    %c2_51 = arith.constant 2 : index
    %c0_52 = arith.constant 0 : index
    %c0_53 = arith.constant 0 : index
    %37 = vector.load %arg4[%c1_50, %c2_51, %c0_52, %c0_53] : memref<3x3x4x4xbf16, #tpu.memory_space<vmem>>, vector<1x1x4x4xbf16>
    %38 = vector.shape_cast %37 : vector<1x1x4x4xbf16> to vector<4x4xbf16>
    %cst_54 = arith.constant dense<0.000000e+00> : vector<64x4xf32>
    %39 = tpu.matmul %36, %38, %cst_54 {dimension_numbers = #tpu.dot_dimension_numbers<[1], [0], [0], [1], [0, 0, 1, 1], [], []>} : vector<64x4xbf16>, vector<4x4xbf16>, vector<64x4xf32> -> vector<64x4xf32>
    %40 = arith.addf %33, %39 : vector<64x4xf32>
    %c0_55 = arith.constant 0 : index
    %c0_56 = arith.constant 0 : index
    %c1_57 = arith.constant 1 : index
    %c0_58 = arith.constant 0 : index
    %c0_59 = arith.constant 0 : index
    %41 = vector.load %arg2[%c0_55, %c0_56, %c1_57, %c0_58, %c0_59] : memref<1x4x8x9x4xbf16, #tpu.memory_space<vmem>>, vector<1x1x7x8x4xbf16>
    %42 = vector.shape_cast %41 : vector<1x1x7x8x4xbf16> to vector<7x8x4xbf16>
    %c0_60 = arith.constant 0 : index
    %c0_61 = arith.constant 0 : index
    %c0_62 = arith.constant 0 : index
    %c0_63 = arith.constant 0 : index
    %c0_64 = arith.constant 0 : index
    %43 = vector.load %arg3[%c0_60, %c0_61, %c0_62, %c0_63, %c0_64] : memref<1x4x1x9x4xbf16, #tpu.memory_space<vmem>>, vector<1x1x1x8x4xbf16>
    %44 = vector.shape_cast %43 : vector<1x1x1x8x4xbf16> to vector<1x8x4xbf16>
    %45 = tpu.concatenate %42, %44 in 0 : vector<7x8x4xbf16>, vector<1x8x4xbf16> -> vector<8x8x4xbf16>
    %46 = vector.shape_cast %45 : vector<8x8x4xbf16> to vector<64x4xbf16>
    %c2_65 = arith.constant 2 : index
    %c0_66 = arith.constant 0 : index
    %c0_67 = arith.constant 0 : index
    %c0_68 = arith.constant 0 : index
    %47 = vector.load %arg4[%c2_65, %c0_66, %c0_67, %c0_68] : memref<3x3x4x4xbf16, #tpu.memory_space<vmem>>, vector<1x1x4x4xbf16>
    %48 = vector.shape_cast %47 : vector<1x1x4x4xbf16> to vector<4x4xbf16>
    %cst_69 = arith.constant dense<0.000000e+00> : vector<64x4xf32>
    %49 = tpu.matmul %46, %48, %cst_69 {dimension_numbers = #tpu.dot_dimension_numbers<[1], [0], [0], [1], [0, 0, 1, 1], [], []>} : vector<64x4xbf16>, vector<4x4xbf16>, vector<64x4xf32> -> vector<64x4xf32>
    %50 = arith.addf %40, %49 : vector<64x4xf32>
    %c0_70 = arith.constant 0 : index
    %c1_71 = arith.constant 1 : index
    %c1_72 = arith.constant 1 : index
    %c0_73 = arith.constant 0 : index
    %c0_74 = arith.constant 0 : index
    %51 = vector.load %arg2[%c0_70, %c1_71, %c1_72, %c0_73, %c0_74] : memref<1x4x8x9x4xbf16, #tpu.memory_space<vmem>>, vector<1x1x7x8x4xbf16>
    %52 = vector.shape_cast %51 : vector<1x1x7x8x4xbf16> to vector<7x8x4xbf16>
    %c0_75 = arith.constant 0 : index
    %c1_76 = arith.constant 1 : index
    %c0_77 = arith.constant 0 : index
    %c0_78 = arith.constant 0 : index
    %c0_79 = arith.constant 0 : index
    %53 = vector.load %arg3[%c0_75, %c1_76, %c0_77, %c0_78, %c0_79] : memref<1x4x1x9x4xbf16, #tpu.memory_space<vmem>>, vector<1x1x1x8x4xbf16>
    %54 = vector.shape_cast %53 : vector<1x1x1x8x4xbf16> to vector<1x8x4xbf16>
    %55 = tpu.concatenate %52, %54 in 0 : vector<7x8x4xbf16>, vector<1x8x4xbf16> -> vector<8x8x4xbf16>
    %56 = vector.shape_cast %55 : vector<8x8x4xbf16> to vector<64x4xbf16>
    %c2_80 = arith.constant 2 : index
    %c1_81 = arith.constant 1 : index
    %c0_82 = arith.constant 0 : index
    %c0_83 = arith.constant 0 : index
    %57 = vector.load %arg4[%c2_80, %c1_81, %c0_82, %c0_83] : memref<3x3x4x4xbf16, #tpu.memory_space<vmem>>, vector<1x1x4x4xbf16>
    %58 = vector.shape_cast %57 : vector<1x1x4x4xbf16> to vector<4x4xbf16>
    %cst_84 = arith.constant dense<0.000000e+00> : vector<64x4xf32>
    %59 = tpu.matmul %56, %58, %cst_84 {dimension_numbers = #tpu.dot_dimension_numbers<[1], [0], [0], [1], [0, 0, 1, 1], [], []>} : vector<64x4xbf16>, vector<4x4xbf16>, vector<64x4xf32> -> vector<64x4xf32>
    %60 = arith.addf %50, %59 : vector<64x4xf32>
    %c0_85 = arith.constant 0 : index
    %c0_86 = arith.constant 0 : index
    %c1_87 = arith.constant 1 : index
    %c1_88 = arith.constant 1 : index
    %c0_89 = arith.constant 0 : index
    %61 = vector.load %arg2[%c0_85, %c0_86, %c1_87, %c1_88, %c0_89] : memref<1x4x8x9x4xbf16, #tpu.memory_space<vmem>>, vector<1x1x7x8x4xbf16>
    %62 = vector.shape_cast %61 : vector<1x1x7x8x4xbf16> to vector<7x8x4xbf16>
    %c0_90 = arith.constant 0 : index
    %c0_91 = arith.constant 0 : index
    %c0_92 = arith.constant 0 : index
    %c1_93 = arith.constant 1 : index
    %c0_94 = arith.constant 0 : index
    %63 = vector.load %arg3[%c0_90, %c0_91, %c0_92, %c1_93, %c0_94] : memref<1x4x1x9x4xbf16, #tpu.memory_space<vmem>>, vector<1x1x1x8x4xbf16>
    %64 = vector.shape_cast %63 : vector<1x1x1x8x4xbf16> to vector<1x8x4xbf16>
    %65 = tpu.concatenate %62, %64 in 0 : vector<7x8x4xbf16>, vector<1x8x4xbf16> -> vector<8x8x4xbf16>
    %66 = vector.shape_cast %65 : vector<8x8x4xbf16> to vector<64x4xbf16>
    %c2_95 = arith.constant 2 : index
    %c2_96 = arith.constant 2 : index
    %c0_97 = arith.constant 0 : index
    %c0_98 = arith.constant 0 : index
    %67 = vector.load %arg4[%c2_95, %c2_96, %c0_97, %c0_98] : memref<3x3x4x4xbf16, #tpu.memory_space<vmem>>, vector<1x1x4x4xbf16>
    %68 = vector.shape_cast %67 : vector<1x1x4x4xbf16> to vector<4x4xbf16>
    %cst_99 = arith.constant dense<0.000000e+00> : vector<64x4xf32>
    %69 = tpu.matmul %66, %68, %cst_99 {dimension_numbers = #tpu.dot_dimension_numbers<[1], [0], [0], [1], [0, 0, 1, 1], [], []>} : vector<64x4xbf16>, vector<4x4xbf16>, vector<64x4xf32> -> vector<64x4xf32>
    %70 = arith.addf %60, %69 : vector<64x4xf32>
    %cst_100 = arith.constant dense<0.000000e+00> : vector<4xf32>
    %71 = vector.multi_reduction <add>, %70, %cst_100 [0] : vector<64x4xf32> to vector<4xf32>
    %72 = vector.shape_cast %71 : vector<4xf32> to vector<1x4xf32>
    %c0_101 = arith.constant 0 : index
    %c0_102 = arith.constant 0 : index
    %c0_103 = arith.constant 0 : index
    %c0_104 = arith.constant 0 : index
    %73 = vector.load %arg6[%c0_101, %c0_102, %c0_103, %c0_104] : memref<1x1x2x4xf32, #tpu.memory_space<vmem>>, vector<1x1x1x4xf32>
    %74 = vector.shape_cast %73 : vector<1x1x1x4xf32> to vector<1x4xf32>
    %75 = vector.shape_cast %72 : vector<1x4xf32> to vector<1x1x1x4xf32>
    tpu.vector_store %arg6[%c0_101, %c0_102, %c0_103, %c0_104], %75 {strides = array<i32>} : memref<1x1x2x4xf32, #tpu.memory_space<vmem>>, vector<1x1x1x4xf32>,
    %76 = arith.mulf %70, %70 : vector<64x4xf32>
    %cst_105 = arith.constant dense<0.000000e+00> : vector<4xf32>
    %77 = vector.multi_reduction <add>, %76, %cst_105 [0] : vector<64x4xf32> to vector<4xf32>
    %78 = vector.shape_cast %77 : vector<4xf32> to vector<1x4xf32>
    %c0_106 = arith.constant 0 : index
    %c0_107 = arith.constant 0 : index
    %c1_108 = arith.constant 1 : index
    %c0_109 = arith.constant 0 : index
    %79 = vector.load %arg6[%c0_106, %c0_107, %c1_108, %c0_109] : memref<1x1x2x4xf32, #tpu.memory_space<vmem>>, vector<1x1x1x4xf32>
    %80 = vector.shape_cast %79 : vector<1x1x1x4xf32> to vector<1x4xf32>
    %81 = vector.shape_cast %78 : vector<1x4xf32> to vector<1x1x1x4xf32>
    tpu.vector_store %arg6[%c0_106, %c0_107, %c1_108, %c0_109], %81 {strides = array<i32>} : memref<1x1x2x4xf32, #tpu.memory_space<vmem>>, vector<1x1x1x4xf32>,
    %82 = arith.truncf %70 : vector<64x4xf32> to vector<64x4xbf16>
    %c0_110 = arith.constant 0 : index
    %c0_111 = arith.constant 0 : index
    %c0_112 = arith.constant 0 : index
    %c0_113 = arith.constant 0 : index
    %83 = vector.load %arg5[%c0_110, %c0_111, %c0_112, %c0_113] : memref<1x1x64x4xbf16, #tpu.memory_space<vmem>>, vector<1x1x64x4xbf16>
    %84 = vector.shape_cast %83 : vector<1x1x64x4xbf16> to vector<64x4xbf16>
    %85 = vector.shape_cast %82 : vector<64x4xbf16> to vector<1x1x64x4xbf16>
    tpu.vector_store %arg5[%c0_110, %c0_111, %c0_112, %c0_113], %85 {strides = array<i32>} : memref<1x1x64x4xbf16, #tpu.memory_space<vmem>>, vector<1x1x64x4xbf16>,
    return
  }
  func.func @transform_0(%arg0: i32, %arg1: i32) -> (i32, i32, i32, i32, i32) {
    %c0_i32 = arith.constant 0 : i32
    %c0_i32_0 = arith.constant 0 : i32
    %c0_i32_1 = arith.constant 0 : i32
    %c0_i32_2 = arith.constant 0 : i32
    return %arg0, %c0_i32, %arg1, %c0_i32_0, %c0_i32_1 : i32, i32, i32, i32, i32
  }
  func.func @transform_1(%arg0: i32, %arg1: i32) -> (i32, i32, i32, i32, i32) {
    %c1_i32 = arith.constant 1 : i32
    %0 = arith.addi %arg1, %c1_i32 : i32
    %c8_i32 = arith.constant 8 : i32
    %1 = arith.muli %0, %c8_i32 : i32
    %c0_i32 = arith.constant 0 : i32
    %c0_i32_0 = arith.constant 0 : i32
    %c0_i32_1 = arith.constant 0 : i32
    %c0_i32_2 = arith.constant 0 : i32
    return %arg0, %c0_i32, %1, %c0_i32_0, %c0_i32_1 : i32, i32, i32, i32, i32
  }
  func.func @transform_2(%arg0: i32, %arg1: i32) -> (i32, i32, i32, i32) {
    %c0_i32 = arith.constant 0 : i32
    %c0_i32_0 = arith.constant 0 : i32
    %c0_i32_1 = arith.constant 0 : i32
    %c0_i32_2 = arith.constant 0 : i32
    %c0_i32_3 = arith.constant 0 : i32
    return %c0_i32, %c0_i32_0, %c0_i32_1, %c0_i32_2 : i32, i32, i32, i32
  }
  func.func @transform_3(%arg0: i32, %arg1: i32) -> (i32, i32, i32, i32) {
    %c0_i32 = arith.constant 0 : i32
    %c0_i32_0 = arith.constant 0 : i32
    %c0_i32_1 = arith.constant 0 : i32
    return %arg0, %arg1, %c0_i32, %c0_i32_0 : i32, i32, i32, i32
  }
  func.func @transform_4(%arg0: i32, %arg1: i32) -> (i32, i32, i32, i32) {
    %c0_i32 = arith.constant 0 : i32
    %c0_i32_0 = arith.constant 0 : i32
    %c0_i32_1 = arith.constant 0 : i32
    return %arg0, %arg1, %c0_i32, %c0_i32_0 : i32, i32, i32, i32
  }
}

</mosaic_0001>

<bundles_post_ra>
// kernel: downsample_forward.1
= control target key start
LH: loop header
LB: loop body
LE: loop exit
PB: predicated region body
PF: predicated region fallthrough
CT: control target
= control target key end

     0   :  { %s2997_s15 = smov 0   ;;  %s2999_s16 = smov 0   ;;  %s3510_s0 = inlined_call_operand.vmem [shape: bf16[2,4,9,9,4], index: 0, kind: input, shape index: {}, may-alias: {0,1}]   ;;  %s3511_s1 = inlined_call_operand.vmem [shape: bf16[2,4,9,9,4], index: 1, kind: input, shape index: {}, may-alias: {0,1}]   ;;  %s3512_s2 = inlined_call_operand.vmem [shape: bf16[3,3,4,4], index: 2, kind: input, shape index: {}]   ;;  %s3513_s3 = inlined_call_operand.vmem [shape: bf16[2,1,64,4], index: 3, kind: output, shape index: {0}]   ;;  %s3514_s4 = inlined_call_operand.vmem [shape: f32[2,1,2,4], index: 4, kind: output, shape index: {1}]  }
   0x1   :  { %s3001_s17 = smov 0   ;;  %s3003_s18 = smov 0  }
   0x2   :  { %s3005_s19 = smov 0  }
   0x3 LB: > { %s27_s20 = sadd.s32 1, %s2962_s18  ;;  %p43_p1 = scmp.ne.s32.totalorder %s2954_s16, %s2950_s15  ;;  %s2966_s19 = sphi %s3005_s19, %s15_s19   ;;  %s2962_s18 = sphi %s3003_s18, %s3521_s18   ;;  %s2958_s17 = sphi %s3001_s17, %s3520_s17   ;;  %s2954_s16 = sphi %s2999_s16, %s3519_s16   ;;  %s2950_s15 = sphi %s2997_s15, %s3518_s15  }
   0x4   : > { %p29_p0 = scmp.ge.s32.totalorder %s27_s20, 2  ;;  %p44_p2 = scmp.eq.s32.totalorder %s2966_s19, 0 }
   0x5   : > { %s36_s23 = sadd.s32 1, %s2954_s16  ;;  %p2475_p5 = scmp.ge.s32.totalorder %s2966_s19, 2 }
   0x6   : > { %s3523_s20 = smov (%p29_p0, %s27_s20), 0  ;;  %p3028_p3 = por %p44_p2, %p43_p1 }
   0x7   : > { %s31_s22 = ssub.s32 %s2962_s18, %s3523_s20  ;;  %181 = sbr.rel (%p2475_p5) target bundleno = 73 (0x49), region = 20 }
   0x8   : > { %p34_p4 = scmp.eq.s32.totalorder %s31_s22, 0 }
   0xa   : > { %s3036_s24 = scalar_select %p34_p4, %s2954_s16, %s36_s23  }
   0xc   : > { %184 = sbr.rel (!%p3028_p3) target bundleno = 66 (0x42), region = 24  ;;  %s186_s25 = sand.u32 (%p3028_p3), 1, %s2954_s16  }
   0xd   : > { %s2817_s26 = smul.u32 (%p3028_p3), 288, %s2962_s18  ;;  %s2476_s27 = sshll.u32 (%p3028_p3), %s186_s25, 8 }
   0xe   : > { %s3048_s5 = scalar_lea.vmem (%p3028_p3), [#allocation2], %s2476_s27   ;;  %s3050_s6 = smov (%p3028_p3), 0  }
   0xf   : > { %s3046_s30 = scalar_lea.vmem (%p3028_p3), %s3510_s0, %s2817_s26  }
  0x11 LB: >> { %v221_v0 = vld [vmem:[%s3046_s30] sm:$0xf]  ;;  %v223_v1 = vld [vmem:[%s3046_s30 + $0x4] sm:$0xf]  ;;  %v225_v2 = vld [vmem:[%s3046_s30 + $0x8] sm:$0xf]  ;;  %s2970_s6 = sphi %s3050_s6, %s215_s6  }
  0x12   : >> { %222 = vst [vmem:[%s3048_s5] sm:$0xf] %v221_v0  ;;  %224 = vst [vmem:[%s3048_s5 + $0x4] sm:$0xf] %v223_v1  ;;  %v227_v3 = vld [vmem:[%s3046_s30 + $0xc] sm:$0xf]  ;;  %s215_s6 = sadd.s32 1, %s2970_s6  }
  0x13   : >> { %226 = vst [vmem:[%s3048_s5 + $0x8] sm:$0xf] %v225_v2  ;;  %v229_v4 = vld [vmem:[%s3046_s30 + $0x10] sm:$0xf]  ;;  %v231_v5 = vld [vmem:[%s3046_s30 + $0x14] sm:$0xf] }
  0x14   : >> { %228 = vst [vmem:[%s3048_s5 + $0xc] sm:$0xf] %v227_v3  ;;  %230 = vst [vmem:[%s3048_s5 + $0x10] sm:$0xf] %v229_v4  ;;  %v233_v6 = vld [vmem:[%s3046_s30 + $0x18] sm:$0xf] }
  0x15   : >> { %232 = vst [vmem:[%s3048_s5 + $0x14] sm:$0xf] %v231_v5  ;;  %v235_v7 = vld [vmem:[%s3046_s30 + $0x1c] sm:$0xf]  ;;  %v237_v8 = vld [vmem:[%s3046_s30 + $0x20] sm:$0xf] }
  0x16   : >> { %234 = vst [vmem:[%s3048_s5 + $0x18] sm:$0xf] %v233_v6  ;;  %236 = vst [vmem:[%s3048_s5 + $0x1c] sm:$0xf] %v235_v7  ;;  %v239_v9 = vld [vmem:[%s3046_s30 + $0x24] sm:$0xf] }
  0x17   : >> { %238 = vst [vmem:[%s3048_s5 + $0x20] sm:$0xf] %v237_v8  ;;  %v241_v10 = vld [vmem:[%s3046_s30 + $0x28] sm:$0xf]  ;;  %v243_v11 = vld [vmem:[%s3046_s30 + $0x2c] sm:$0xf] }
  0x18   : >> { %240 = vst [vmem:[%s3048_s5 + $0x24] sm:$0xf] %v239_v9  ;;  %242 = vst [vmem:[%s3048_s5 + $0x28] sm:$0xf] %v241_v10  ;;  %v245_v12 = vld [vmem:[%s3046_s30 + $0x30] sm:$0xf] }
  0x19   : >> { %244 = vst [vmem:[%s3048_s5 + $0x2c] sm:$0xf] %v243_v11  ;;  %v247_v13 = vld [vmem:[%s3046_s30 + $0x34] sm:$0xf]  ;;  %v249_v14 = vld [vmem:[%s3046_s30 + $0x38] sm:$0xf] }
  0x1a   : >> { %246 = vst [vmem:[%s3048_s5 + $0x30] sm:$0xf] %v245_v12  ;;  %248 = vst [vmem:[%s3048_s5 + $0x34] sm:$0xf] %v247_v13  ;;  %v251_v15 = vld [vmem:[%s3046_s30 + $0x3c] sm:$0xf] }
  0x1b   : >> { %250 = vst [vmem:[%s3048_s5 + $0x38] sm:$0xf] %v249_v14  ;;  %v253_v16 = vld [vmem:[%s3046_s30 + $0x48] sm:$0xf]  ;;  %v255_v17 = vld [vmem:[%s3046_s30 + $0x4c] sm:$0xf] }
  0x1c   : >> { %252 = vst [vmem:[%s3048_s5 + $0x3c] sm:$0xf] %v251_v15  ;;  %254 = vst [vmem:[%s3048_s5 + $0x40] sm:$0xf] %v253_v16  ;;  %v257_v18 = vld [vmem:[%s3046_s30 + $0x50] sm:$0xf] }
  0x1d   : >> { %256 = vst [vmem:[%s3048_s5 + $0x44] sm:$0xf] %v255_v17  ;;  %v259_v19 = vld [vmem:[%s3046_s30 + $0x54] sm:$0xf]  ;;  %v261_v20 = vld [vmem:[%s3046_s30 + $0x58] sm:$0xf] }
  0x1e   : >> { %258 = vst [vmem:[%s3048_s5 + $0x48] sm:$0xf] %v257_v18  ;;  %260 = vst [vmem:[%s3048_s5 + $0x4c] sm:$0xf] %v259_v19  ;;  %v263_v21 = vld [vmem:[%s3046_s30 + $0x5c] sm:$0xf] }
  0x1f   : >> { %262 = vst [vmem:[%s3048_s5 + $0x50] sm:$0xf] %v261_v20  ;;  %v265_v22 = vld [vmem:[%s3046_s30 + $0x60] sm:$0xf]  ;;  %v267_v23 = vld [vmem:[%s3046_s30 + $0x64] sm:$0xf] }
  0x20   : >> { %264 = vst [vmem:[%s3048_s5 + $0x54] sm:$0xf] %v263_v21  ;;  %266 = vst [vmem:[%s3048_s5 + $0x58] sm:$0xf] %v265_v22  ;;  %v269_v24 = vld [vmem:[%s3046_s30 + $0x68] sm:$0xf] }
  0x21   : >> { %268 = vst [vmem:[%s3048_s5 + $0x5c] sm:$0xf] %v267_v23  ;;  %v271_v25 = vld [vmem:[%s3046_s30 + $0x6c] sm:$0xf]  ;;  %v273_v26 = vld [vmem:[%s3046_s30 + $0x70] sm:$0xf] }
  0x22   : >> { %270 = vst [vmem:[%s3048_s5 + $0x60] sm:$0xf] %v269_v24  ;;  %272 = vst [vmem:[%s3048_s5 + $0x64] sm:$0xf] %v271_v25  ;;  %v275_v27 = vld [vmem:[%s3046_s30 + $0x74] sm:$0xf] }
  0x23   : >> { %274 = vst [vmem:[%s3048_s5 + $0x68] sm:$0xf] %v273_v26  ;;  %v277_v28 = vld [vmem:[%s3046_s30 + $0x78] sm:$0xf]  ;;  %v279_v29 = vld [vmem:[%s3046_s30 + $0x7c] sm:$0xf] }
  0x24   : >> { %276 = vst [vmem:[%s3048_s5 + $0x6c] sm:$0xf] %v275_v27  ;;  %278 = vst [vmem:[%s3048_s5 + $0x70] sm:$0xf] %v277_v28  ;;  %v281_v30 = vld [vmem:[%s3046_s30 + $0x80] sm:$0xf] }
  0x25   : >> { %280 = vst [vmem:[%s3048_s5 + $0x74] sm:$0xf] %v279_v29  ;;  %v283_v31 = vld [vmem:[%s3046_s30 + $0x84] sm:$0xf]  ;;  %v285_v32 = vld [vmem:[%s3046_s30 + $0x90] sm:$0xf] }
  0x26   : >> { %282 = vst [vmem:[%s3048_s5 + $0x78] sm:$0xf] %v281_v30  ;;  %284 = vst [vmem:[%s3048_s5 + $0x7c] sm:$0xf] %v283_v31  ;;  %v287_v33 = vld [vmem:[%s3046_s30 + $0x94] sm:$0xf] }
  0x27   : >> { %286 = vst [vmem:[%s3048_s5 + $0x80] sm:$0xf] %v285_v32  ;;  %v289_v34 = vld [vmem:[%s3046_s30 + $0x98] sm:$0xf]  ;;  %v291_v35 = vld [vmem:[%s3046_s30 + $0x9c] sm:$0xf] }
  0x28   : >> { %288 = vst [vmem:[%s3048_s5 + $0x84] sm:$0xf] %v287_v33  ;;  %290 = vst [vmem:[%s3048_s5 + $0x88] sm:$0xf] %v289_v34  ;;  %v293_v36 = vld [vmem:[%s3046_s30 + $0xa0] sm:$0xf] }
  0x29   : >> { %292 = vst [vmem:[%s3048_s5 + $0x8c] sm:$0xf] %v291_v35  ;;  %v295_v37 = vld [vmem:[%s3046_s30 + $0xa4] sm:$0xf]  ;;  %v297_v38 = vld [vmem:[%s3046_s30 + $0xa8] sm:$0xf] }
  0x2a   : >> { %294 = vst [vmem:[%s3048_s5 + $0x90] sm:$0xf] %v293_v36  ;;  %296 = vst [vmem:[%s3048_s5 + $0x94] sm:$0xf] %v295_v37  ;;  %v299_v39 = vld [vmem:[%s3046_s30 + $0xac] sm:$0xf] }
  0x2b   : >> { %298 = vst [vmem:[%s3048_s5 + $0x98] sm:$0xf] %v297_v38  ;;  %v301_v40 = vld [vmem:[%s3046_s30 + $0xb0] sm:$0xf]  ;;  %v303_v41 = vld [vmem:[%s3046_s30 + $0xb4] sm:$0xf] }
  0x2c   : >> { %300 = vst [vmem:[%s3048_s5 + $0x9c] sm:$0xf] %v299_v39  ;;  %302 = vst [vmem:[%s3048_s5 + $0xa0] sm:$0xf] %v301_v40  ;;  %v305_v42 = vld [vmem:[%s3046_s30 + $0xb8] sm:$0xf] }
  0x2d   : >> { %304 = vst [vmem:[%s3048_s5 + $0xa4] sm:$0xf] %v303_v41  ;;  %v307_v43 = vld [vmem:[%s3046_s30 + $0xbc] sm:$0xf]  ;;  %v309_v44 = vld [vmem:[%s3046_s30 + $0xc0] sm:$0xf] }
  0x2e   : >> { %306 = vst [vmem:[%s3048_s5 + $0xa8] sm:$0xf] %v305_v42  ;;  %308 = vst [vmem:[%s3048_s5 + $0xac] sm:$0xf] %v307_v43  ;;  %v311_v45 = vld [vmem:[%s3046_s30 + $0xc4] sm:$0xf] }
  0x2f   : >> { %310 = vst [vmem:[%s3048_s5 + $0xb0] sm:$0xf] %v309_v44  ;;  %v313_v46 = vld [vmem:[%s3046_s30 + $0xc8] sm:$0xf]  ;;  %v315_v47 = vld [vmem:[%s3046_s30 + $0xcc] sm:$0xf] }
  0x30   : >> { %312 = vst [vmem:[%s3048_s5 + $0xb4] sm:$0xf] %v311_v45  ;;  %314 = vst [vmem:[%s3048_s5 + $0xb8] sm:$0xf] %v313_v46  ;;  %v317_v48 = vld [vmem:[%s3046_s30 + $0xd8] sm:$0xf] }
  0x31   : >> { %316 = vst [vmem:[%s3048_s5 + $0xbc] sm:$0xf] %v315_v47  ;;  %v319_v49 = vld [vmem:[%s3046_s30 + $0xdc] sm:$0xf]  ;;  %v321_v50 = vld [vmem:[%s3046_s30 + $0xe0] sm:$0xf] }
  0x32   : >> { %318 = vst [vmem:[%s3048_s5 + $0xc0] sm:$0xf] %v317_v48  ;;  %320 = vst [vmem:[%s3048_s5 + $0xc4] sm:$0xf] %v319_v49  ;;  %v323_v51 = vld [vmem:[%s3046_s30 + $0xe4] sm:$0xf] }
  0x33   : >> { %322 = vst [vmem:[%s3048_s5 + $0xc8] sm:$0xf] %v321_v50  ;;  %v325_v52 = vld [vmem:[%s3046_s30 + $0xe8] sm:$0xf]  ;;  %v327_v53 = vld [vmem:[%s3046_s30 + $0xec] sm:$0xf] }
  0x34   : >> { %324 = vst [vmem:[%s3048_s5 + $0xcc] sm:$0xf] %v323_v51  ;;  %326 = vst [vmem:[%s3048_s5 + $0xd0] sm:$0xf] %v325_v52  ;;  %v329_v54 = vld [vmem:[%s3046_s30 + $0xf0] sm:$0xf] }
  0x35   : >> { %328 = vst [vmem:[%s3048_s5 + $0xd4] sm:$0xf] %v327_v53  ;;  %v331_v55 = vld [vmem:[%s3046_s30 + $0xf4] sm:$0xf]  ;;  %v333_v56 = vld [vmem:[%s3046_s30 + $0xf8] sm:$0xf] }
  0x36   : >> { %330 = vst [vmem:[%s3048_s5 + $0xd8] sm:$0xf] %v329_v54  ;;  %332 = vst [vmem:[%s3048_s5 + $0xdc] sm:$0xf] %v331_v55  ;;  %v335_v57 = vld [vmem:[%s3046_s30 + $0xfc] sm:$0xf] }
  0x37   : >> { %334 = vst [vmem:[%s3048_s5 + $0xe0] sm:$0xf] %v333_v56  ;;  %v337_v58 = vld [vmem:[%s3046_s30 + $0x100] sm:$0xf]  ;;  %v339_v59 = vld [vmem:[%s3046_s30 + $0x104] sm:$0xf] }
  0x38   : >> { %336 = vst [vmem:[%s3048_s5 + $0xe4] sm:$0xf] %v335_v57  ;;  %338 = vst [vmem:[%s3048_s5 + $0xe8] sm:$0xf] %v337_v58  ;;  %v341_v60 = vld [vmem:[%s3046_s30 + $0x108] sm:$0xf] }
  0x39   : >> { %340 = vst [vmem:[%s3048_s5 + $0xec] sm:$0xf] %v339_v59  ;;  %v343_v61 = vld [vmem:[%s3046_s30 + $0x10c] sm:$0xf]  ;;  %v345_v62 = vld [vmem:[%s3046_s30 + $0x110] sm:$0xf] }
  0x3a   : >> { %342 = vst [vmem:[%s3048_s5 + $0xf0] sm:$0xf] %v341_v60  ;;  %344 = vst [vmem:[%s3048_s5 + $0xf4] sm:$0xf] %v343_v61  ;;  %v347_v63 = vld [vmem:[%s3046_s30 + $0x114] sm:$0xf] }
  0x3b   : >> { %346 = vst [vmem:[%s3048_s5 + $0xf8] sm:$0xf] %v345_v62  ;;  %348 = vst [vmem:[%s3048_s5 + $0xfc] sm:$0xf] %v347_v63  ;;  %p214_p6 = scmp.ge.s32.totalorder %s215_s6, 1 }
  0x3d   : > { %217 = sbr.rel (!%p214_p6) target bundleno = 17 (0x11), region = 218 }
  0x42 PF: > { %610 = sbr.rel (!%p3028_p3) target bundleno = 73 (0x49), region = 86  ;;  %s612_s7 = sand.u32 (%p3028_p3), 1, %s2954_s16  }
  0x43   : > { %s2487_s8 = smul.u32 (%p3028_p3), 288, %s2962_s18  ;;  %s2486_s9 = sshll.u32 (%p3028_p3), %s612_s7, 5 }
  0x44   : > { %s614_s13 = scalar_lea.vmem (%p3028_p3), [#allocation3], %s2486_s9 }
  0x45   : > { %s2355_s12 = scalar_lea.vmem (%p3028_p3), %s3511_s1, %s2487_s8 }
  0x46   : > { %v2488_v0 = vld [vmem:[%s2355_s12 + $0x40] sm:$0xff] (%p3028_p3)   ;;  %v2490_v1 = vld [vmem:[%s2355_s12 + $0x88] sm:$0xff] (%p3028_p3)   ;;  %v2492_v2 = vld [vmem:[%s2355_s12 + $0xd0] sm:$0xff] (%p3028_p3)  }
  0x47   : > { %639 = vst [vmem:[%s614_s13] sm:$0xff] %v2488_v0   ;;  %643 = vst [vmem:[%s614_s13 + $0x8] sm:$0xff] %v2490_v1   ;;  %v2494_v3 = vld [vmem:[%s2355_s12 + $0x118] sm:$0xff]  }
  0x48   : > { %647 = vst [vmem:[%s614_s13 + $0x10] sm:$0xff] %v2492_v2   ;;  %651 = vst [vmem:[%s614_s13 + $0x18] sm:$0xff] %v2494_v3  }
  0x49 PF: > { %p2496_p7 = scmp.ge.s32.totalorder %s2966_s19, 1  ;;  %p692_p8 = scmp.lt.s32.totalorder %s2966_s19, 3 }
  0x4b   : > { %p693_p9 = pnand %p2496_p7, %p692_p8 }
  0x4c   : > { %s699_s22 = sand.u32 (!%p693_p9), 1, %s2950_s15   ;;  %p754_p10 = scmp.lt.s32.totalorder (!%p693_p9), %s2958_s17, 1 }
  0x4d   : > { %696 = sbr.rel (%p693_p9) target bundleno = 385 (0x181), region = 127  ;;  %s2497_s23 = sshll.u32 (!%p693_p9), %s699_s22, 8 }
  0x4e   : > { %s3212_s29 = scalar_lea.vmem (!%p693_p9), [#allocation2], %s2497_s23  ;;  %s3344_s23 = sshll.u32 (!%p693_p9), %s699_s22, 5 }
  0x4f   : > { %s3354_s15 = scalar_lea.vmem (!%p693_p9), [#allocation3], %s3344_s23 }
  0x52   : > { %v2510_v4 = vld [vmem:[%s3512_s2 + $0x2] sm:$0x3]  ;;  %vm824_vm0 = vcmask 1041408   ;;  %v779_v6 = vld [vmem:[%s3512_s2] sm:$0x3]  ;;  %vm811_vm1 = vcmask 31744  }
  0x53   : > { %2808 = vmatprep.subr.msk.bf16.mxu1 %vm824_vm0, %v2510_v4  ;;  %2807 = vmatprep.subr.msk.bf16.mxu0 %vm824_vm0, %v2510_v4  ;;  %v826_v5 = vsel %vm824_vm0, %v2510_v4, 0  ;;  %v2527_v7 = vld [vmem:[%s3512_s2 + $0x4] sm:$0x3]  ;;  %v926_v8 = vsel %vm824_vm0, %v779_v6, 0  ;;  %v2890_v10 = vld [vmem:[%s3212_s29 + $0x40] ss:$8 sps:$4 sm:$0xff]  }
  0x54   : > { %2806 = vmatpush3.bf16.msra.mxu1 %v826_v5  ;;  %2716 = vmatpush3.bf16.msra.mxu0 %v826_v5  ;;  %v1151_v9 = vsel %vm824_vm0, %v2527_v7, 0  ;;  %v2891_v11 = vld [vmem:[%s3212_s29 + $0x60] ss:$8 sps:$4 sm:$0xff]   ;;  %v2892_v12 = vld [vmem:[%s3212_s29 + $0x50] ss:$8 sps:$4 sm:$0xff]   ;;  %s3525_s17 = smov (!%p754_p10, %s2958_s17), 1 }
  0x55   : > { %2809 = vmatprep.subr.msk.bf16.mxu1 %vm824_vm0, %v779_v6  ;;  %2810 = vmatprep.subr.msk.bf16.mxu0 %vm824_vm0, %v2527_v7  ;;  %v2544_v13 = vld [vmem:[%s3512_s2 + $0x6] sm:$0x3]  ;;  %v2893_v14 = vld [vmem:[%s3212_s29 + $0x70] ss:$8 sps:$4 sm:$0xff]   ;;  %v2894_v15 = vld [vmem:[%s3212_s29] ss:$8 sps:$4 sm:$0xff]  }
  0x56   : > { %2717 = vmatprep.mubr.msk.bf16.mxu0 %vm811_vm1, %v2890_v10  ;;  %2721 = vmatprep.mubr.msk.bf16.mxu1 %vm811_vm1, %v2891_v11  ;;  %v993_v16 = vld [vmem:[%s3212_s29] sm:$0xf]  ;;  %v994_v17 = vld [vmem:[%s3212_s29 + $0x4] sm:$0x1]  ;;  %v995_v18 = vld [vmem:[%s3212_s29 + $0x8] sm:$0xf] }
  0x57   : > { %2718 = vmatmul.mubr.msk.bf16.vlgmr.msra.gmra.mxu0 %vm811_vm1, %v2892_v12  ;;  %2722 = vmatmul.mubr.msk.bf16.vlgmr.msra.gmra.mxu1 %vm811_vm1, %v2893_v14  ;;  %v2895_v19 = vld [vmem:[%s3212_s29 + $0x10] ss:$8 sps:$4 sm:$0xff]   ;;  %v996_v20 = vld [vmem:[%s3212_s29 + $0xc] sm:$0x1]  ;;  %vm1009_vm2 = vsmask.f32 3328 }
  0x58   : > { %2736 = vmatpush3.bf16.msra.mxu0 %v1151_v9  ;;  %2726 = vmatpush3.bf16.msra.mxu1 %v926_v8  ;;  %vm1010_vm3 = vsmask.f32 7440  ;;  %v1013_v21 = vshrl.u32 %v993_v16, 16  ;;  %v1016_v22 = vshll.u32 %v993_v16, 16  ;;  %v1022_v23 = vshll.u32 %v994_v17, 16  ;;  %s2661_s22 = sshll.u32 %s3525_s17, 5 }
  0x59   : > { %2727 = vmatprep.mubr.msk.bf16.mxu1 %vm811_vm1, %v2894_v15  ;;  %2811 = vmatprep.subr.msk.bf16.mxu1 %vm824_vm0, %v2544_v13  ;;  %v1027_v24 = vshrl.u32 %v995_v18, 16  ;;  %v997_v25 = vld [vmem:[%s3212_s29 + $0x10] sm:$0xf]  ;;  %v1030_v26 = vshll.u32 %v995_v18, 16  ;;  %v1036_v27 = vshll.u32 %v996_v20, 16  ;;  %v1270_v28 = vsel %vm824_vm0, %v2544_v13, 0  ;;  %vm3246_vm4 = vmor %vm1009_vm2, %vm1010_vm3  ;;  %s3456_s27 = scalar_lea.vmem %s3513_s3, %s2661_s22 }
  0x5a   : > { %v998_v29 = vld [vmem:[%s3212_s29 + $0x14] sm:$0x1]  ;;  %v1041_v30 = vshrl.u32 %v997_v25, 16  ;;  %v1015_v31 = vrot.slane %v1013_v21, 4  ;;  %v1018_v32 = vrot.slane %v1016_v22, 5  ;;  %v1024_v33 = vrot.slane %v1022_v23, 5 }
  0x5b   : > { %v1029_v34 = vrot.slane %v1027_v24, 4  ;;  %v999_v35 = vld [vmem:[%s3212_s29 + $0x18] sm:$0xf]  ;;  %v1032_v36 = vrot.slane %v1030_v26, 5  ;;  %v1038_v37 = vrot.slane %v1036_v27, 5  ;;  %v1044_v40 = vshll.u32 %v997_v25, 16 }
  0x5c   : > { %v1000_v38 = vld [vmem:[%s3212_s29 + $0x1c] sm:$0x1]  ;;  %v1043_v39 = vrot.slane %v1041_v30, 4  ;;  %v1019_v41 = vor.u32 %v1018_v32, %v1015_v31  ;;  %v1050_v42 = vshll.u32 %v998_v29, 16  ;;  %v1055_v43 = vshrl.u32 %v999_v35, 16  ;;  %s2501_s28 = sshll.u32 %s3525_s17, 1 }
  0x5d   : > { %v1058_v44 = vshll.u32 %v999_v35, 16  ;;  %v2561_v45 = vld [vmem:[%s3512_s2 + $0x8] sm:$0x3]  ;;  %v1033_v47 = vor.u32 %v1032_v36, %v1029_v34  ;;  %v1046_v48 = vrot.slane %v1044_v40, 5  ;;  %v1064_v49 = vshll.u32 %v1000_v38, 16  ;;  %s769_s5 = scalar_lea.vmem %s3514_s4, %s2501_s28 }
  0x5e   : > { %2812 = vmatprep.subr.msk.bf16.mxu0 %vm824_vm0, %v2561_v45  ;;  %v1389_v50 = vsel %vm824_vm0, %v2561_v45, 0  ;;  %v1020_v51 = vrot.slane %v1019_v41, 4  ;;  %v1052_v52 = vrot.slane %v1050_v42, 5  ;;  %v1057_v53 = vrot.slane %v1055_v43, 4  ;;  %v2896_v58 = vld [vmem:[%s3212_s29 + $0x20] ss:$8 sps:$4 sm:$0xff]  }
  0x5f   : > { %2728 = vmatmul.mubr.msk.bf16.vlgmr.msra.gmra.mxu1 %vm811_vm1, %v2895_v19  ;;  %v1060_v54 = vrot.slane %v1058_v44, 5  ;;  %v1034_v55 = vrot.slane %v1033_v47, 4  ;;  %v1047_v56 = vor.u32 %v1046_v48, %v1043_v39  ;;  %v1066_v57 = vrot.slane %v1064_v49, 5  ;;  %v2897_v61 = vld [vmem:[%s3212_s29 + $0x30] ss:$8 sps:$4 sm:$0xff]  }
  0x60   : > { %2746 = vmatpush3.bf16.msra.mxu1 %v1270_v28  ;;  %v1025_v59 = vsel %vm3246_vm4, %v1020_v51, %v1024_v33  ;;  %v1001_v62 = vld [vmem:[%s3212_s29 + $0x20] sm:$0xf]  ;;  %2731 = vmatprep.mubr.msk.bf16.mxu1 %vm811_vm1, %v2896_v58  ;;  %v1002_v1 = vld [vmem:[%s3212_s29 + $0x24] sm:$0x1]  ;;  %v1003_v2 = vld [vmem:[%s3212_s29 + $0x28] sm:$0xf] }
  0x61   : > { %v1061_v60 = vor.u32 %v1060_v54, %v1057_v53  ;;  %v1039_v63 = vsel %vm3246_vm4, %v1034_v55, %v1038_v37  ;;  %v1048_v0 = vrot.slane %v1047_v56, 4  ;;  %v1069_v3 = vshrl.u32 %v1001_v62, 16  ;;  %v1004_v6 = vld [vmem:[%s3212_s29 + $0x2c] sm:$0x1]  ;;  %v1005_v13 = vld [vmem:[%s3212_s29 + $0x30] sm:$0xf] }
  0x62   : > { %v2528_v4 = vcombine.low %v1025_v59, %v1039_v63  ;;  %v1072_v7 = vshll.u32 %v1001_v62, 16  ;;  %v1078_v8 = vshll.u32 %v1002_v1, 16  ;;  %v1083_v11 = vshrl.u32 %v1003_v2, 16  ;;  %v1006_v18 = vld [vmem:[%s3212_s29 + $0x34] sm:$0x1] }
  0x63   : > { %v1062_v5 = vrot.slane %v1061_v60, 4  ;;  %v1053_v9 = vsel %vm3246_vm4, %v1048_v0, %v1052_v52  ;;  %v1071_v10 = vrot.slane %v1069_v3, 4  ;;  %v1086_v12 = vshll.u32 %v1003_v2, 16  ;;  %v1007_v22 = vld [vmem:[%s3212_s29 + $0x38] sm:$0xf] }
  0x64   : > { %2737 = vmatprep.mubr.msk.bf16.mxu0 %vm811_vm1, %v2528_v4  ;;  %v1074_v15 = vrot.slane %v1072_v7, 5  ;;  %v1080_v16 = vrot.slane %v1078_v8, 5  ;;  %v1092_v17 = vshll.u32 %v1004_v6, 16  ;;  %v1085_v20 = vrot.slane %v1083_v11, 4  ;;  %v1008_v23 = vld [vmem:[%s3212_s29 + $0x3c] sm:$0x1] }
  0x65   : > { %v1067_v14 = vsel %vm3246_vm4, %v1062_v5, %v1066_v57  ;;  %v1088_v21 = vrot.slane %v1086_v12, 5  ;;  %v1097_v26 = vshrl.u32 %v1005_v13, 16  ;;  %v1100_v27 = vshll.u32 %v1005_v13, 16  ;;  %v2898_v36 = vld [vmem:[%s3212_s29 + $0x80] ss:$8 sps:$4 sm:$0xff]  }
  0x66   : > { %v2529_v19 = vcombine.low %v1053_v9, %v1067_v14  ;;  %v1075_v24 = vor.u32 %v1074_v15, %v1071_v10  ;;  %v1094_v25 = vrot.slane %v1092_v17, 5  ;;  %v1106_v29 = vshll.u32 %v1006_v18, 16  ;;  %v2586_v41 = vld [vmem:[%s3512_s2 + $0xa] sm:$0x3]  ;;  %v2899_v49 = vld [vmem:[%s3212_s29 + $0x90] ss:$8 sps:$4 sm:$0xff]  }
  0x67   : > { %2732 = vmatmul.mubr.msk.bf16.gmra.mxu1 %vm811_vm1, %v2897_v61  ;;  %v1089_v28 = vor.u32 %v1088_v21, %v1085_v20  ;;  %v1111_v30 = vshrl.u32 %v1007_v22, 16  ;;  %v1114_v31 = vshll.u32 %v1007_v22, 16  ;;  %v1099_v33 = vrot.slane %v1097_v26, 4  ;;  %2813 = vmatprep.subr.msk.bf16.mxu1 %vm824_vm0, %v2586_v41  ;;  %v2602_v54 = vld [vmem:[%s3512_s2 + $0xc] sm:$0x3] }
  0x68   : > { %2738 = vmatmul.mubr.msk.bf16.vlgmr.msra.gmra.mxu0 %vm811_vm1, %v2529_v19  ;;  %v1076_v32 = vrot.slane %v1075_v24, 4  ;;  %v1102_v34 = vrot.slane %v1100_v27, 5  ;;  %v1120_v35 = vshll.u32 %v1008_v23, 16  ;;  %v1108_v38 = vrot.slane %v1106_v29, 5  ;;  %2747 = vmatprep.mubr.msk.bf16.mxu1 %vm811_vm1, %v2898_v36  ;;  %v2900_v56 = vld [vmem:[%s3212_s29 + $0xc0] ss:$8 sps:$4 sm:$0xff]  }
  0x69   : > { %2756 = vmatpush3.bf16.msra.mxu0 %v1389_v50  ;;  %v1090_v37 = vrot.slane %v1089_v28, 4  ;;  %v1113_v39 = vrot.slane %v1111_v30, 4  ;;  %v1116_v40 = vrot.slane %v1114_v31, 5  ;;  %v1619_v45 = vsel %vm824_vm0, %v2586_v41, 0  ;;  %v2902_v57 = vld [vmem:[%s3212_s29 + $0xa0] ss:$8 sps:$4 sm:$0xff]  }
  0x6a   : > { %v1081_v42 = vsel %vm3246_vm4, %v1076_v32, %v1080_v16  ;;  %v1103_v43 = vor.u32 %v1102_v34, %v1099_v33  ;;  %v1122_v44 = vrot.slane %v1120_v35, 5  ;;  %2814 = vmatprep.subr.msk.bf16.mxu0 %vm824_vm0, %v2602_v54  ;;  %v2903_v59 = vld [vmem:[%s3212_s29 + $0xb0] ss:$8 sps:$4 sm:$0xff]   ;;  %v1738_v60 = vsel %vm824_vm0, %v2602_v54, 0  ;;  %v2570_v61 = vld [vmem:[%s3212_s29 + $0x80] sm:$0xf] }
  0x6b   : > { %v1095_v47 = vsel %vm3246_vm4, %v1090_v37, %v1094_v25  ;;  %v1117_v48 = vor.u32 %v1116_v40, %v1113_v39  ;;  %v2571_v62 = vld [vmem:[%s3212_s29 + $0x84] sm:$0x1]  ;;  %v2572_v63 = vld [vmem:[%s3212_s29 + $0x88] sm:$0xf]  ;;  %v2573_v0 = vld [vmem:[%s3212_s29 + $0x8c] sm:$0x1] }
  0x6c   : > { %v2530_v50 = vcombine.low %v1081_v42, %v1095_v47  ;;  %v1104_v51 = vrot.slane %v1103_v43, 4  ;;  %v2901_v1 = vld [vmem:[%s3212_s29 + $0xd0] ss:$8 sps:$4 sm:$0xff]   ;;  %v1481_v2 = vshrl.u32 %v2570_v61, 16  ;;  %v1484_v3 = vshll.u32 %v2570_v61, 16 }
  0x6d   : > { %v1118_v52 = vrot.slane %v1117_v48, 4  ;;  %v1490_v4 = vshll.u32 %v2571_v62, 16  ;;  %v1495_v5 = vshrl.u32 %v2572_v63, 16  ;;  %v2619_v6 = vld [vmem:[%s3512_s2 + $0xe] sm:$0x3]  ;;  %v1498_v8 = vshll.u32 %v2572_v63, 16 }
  0x6e   : > { %2741 = vmatprep.mubr.msk.bf16.mxu0 %vm811_vm1, %v2530_v50  ;;  %v1109_v53 = vsel %vm3246_vm4, %v1104_v51, %v1108_v38  ;;  %v2904_v7 = vld [vmem:[%s3212_s29 + $0xe0] ss:$8 sps:$4 sm:$0xff]   ;;  %v1504_v9 = vshll.u32 %v2573_v0, 16  ;;  %v2574_v10 = vld [vmem:[%s3212_s29 + $0x90] sm:$0xf]  ;;  %v1483_v12 = vrot.slane %v1481_v2, 4 }
  0x6f   : > { %2748 = vmatmul.mubr.msk.bf16.vlgmr.msra.gmra.mxu1 %vm811_vm1, %v2899_v49  ;;  %v1123_v55 = vsel %vm3246_vm4, %v1118_v52, %v1122_v44  ;;  %v2575_v11 = vld [vmem:[%s3212_s29 + $0x94] sm:$0x1]  ;;  %v1486_v13 = vrot.slane %v1484_v3, 5  ;;  %v1492_v14 = vrot.slane %v1490_v4, 5  ;;  %v1497_v15 = vrot.slane %v1495_v5, 4 }
  0x70   : > { %2766 = vmatpush3.bf16.msra.mxu1 %v1619_v45  ;;  %v2531_v58 = vcombine.low %v1109_v53, %v1123_v55  ;;  %2751 = vmatprep.mubr.msk.bf16.mxu1 %vm811_vm1, %v2902_v57  ;;  %v2576_v16 = vld [vmem:[%s3212_s29 + $0x98] sm:$0xf]  ;;  %v1500_v17 = vrot.slane %v1498_v8, 5  ;;  %v1506_v18 = vrot.slane %v1504_v9, 5  ;;  %v2577_v19 = vld [vmem:[%s3212_s29 + $0x9c] sm:$0x1] }
  0x71   : > { %2815 = vmatprep.subr.msk.bf16.mxu1 %vm824_vm0, %v2619_v6  ;;  %v1509_v20 = vshrl.u32 %v2574_v10, 16  ;;  %v1512_v21 = vshll.u32 %v2574_v10, 16  ;;  %v1487_v22 = vor.u32 %v1486_v13, %v1483_v12  ;;  %v1518_v23 = vshll.u32 %v2575_v11, 16  ;;  %v2905_v36 = vld [vmem:[%s3212_s29 + $0xf0] ss:$8 sps:$4 sm:$0xff]  }
  0x72   : > { %2742 = vmatmul.mubr.msk.bf16.gmra.mxu0 %vm811_vm1, %v2531_v58  ;;  %v1523_v24 = vshrl.u32 %v2576_v16, 16  ;;  %v1526_v25 = vshll.u32 %v2576_v16, 16  ;;  %v1501_v26 = vor.u32 %v1500_v17, %v1497_v15  ;;  %v1532_v29 = vshll.u32 %v2577_v19, 16  ;;  %v2642_v40 = vld [vmem:[%s3512_s2 + $0x10] sm:$0x3] }
  0x73   : > { %2757 = vmatprep.mubr.msk.bf16.mxu0 %vm811_vm1, %v2900_v56  ;;  %v1511_v27 = vrot.slane %v1509_v20, 4  ;;  %v1514_v28 = vrot.slane %v1512_v21, 5  ;;  %v1488_v30 = vrot.slane %v1487_v22, 4  ;;  %v1520_v35 = vrot.slane %v1518_v23, 5  ;;  %v2906_v43 = vld [vmem:[%s3212_s29 + $0x8] ss:$8 sps:$4 sm:$0xff]  }
  0x74   : > { %v1525_v31 = vrot.slane %v1523_v24, 4  ;;  %v1528_v32 = vrot.slane %v1526_v25, 5  ;;  %v1502_v33 = vrot.slane %v1501_v26, 4  ;;  %v1534_v39 = vrot.slane %v1532_v29, 5  ;;  %v2578_v45 = vld [vmem:[%s3212_s29 + $0xa0] sm:$0xf] }
  0x75   : > { %v1515_v34 = vor.u32 %v1514_v28, %v1511_v27  ;;  %v1493_v37 = vsel %vm3246_vm4, %v1488_v30, %v1492_v14  ;;  %v1858_v44 = vsel %vm824_vm0, %v2619_v6, 0  ;;  %v2579_v47 = vld [vmem:[%s3212_s29 + $0xa4] sm:$0x1]  ;;  %v2580_v50 = vld [vmem:[%s3212_s29 + $0xa8] sm:$0xf]  ;;  %v1537_v52 = vshrl.u32 %v2578_v45, 16 }
  0x76   : > { %v1529_v38 = vor.u32 %v1528_v32, %v1525_v31  ;;  %v1507_v41 = vsel %vm3246_vm4, %v1502_v33, %v1506_v18  ;;  %v2581_v51 = vld [vmem:[%s3212_s29 + $0xac] sm:$0x1]  ;;  %v1540_v54 = vshll.u32 %v2578_v45, 16  ;;  %v1546_v55 = vshll.u32 %v2579_v47, 16  ;;  %v2582_v57 = vld [vmem:[%s3212_s29 + $0xb0] sm:$0xf] }
  0x77   : > { %2752 = vmatmul.mubr.msk.bf16.gmra.mxu1 %vm811_vm1, %v2903_v59  ;;  %v1516_v42 = vrot.slane %v1515_v34, 4  ;;  %v2587_v48 = vcombine.low %v1493_v37, %v1507_v41  ;;  %v1551_v56 = vshrl.u32 %v2580_v50, 16  ;;  %v1539_v59 = vrot.slane %v1537_v52, 4  ;;  %v2583_v62 = vld [vmem:[%s3212_s29 + $0xb4] sm:$0x1] }
  0x78   : > { %v1530_v49 = vrot.slane %v1529_v38, 4  ;;  %v1560_v61 = vshll.u32 %v2581_v51, 16  ;;  %v1542_v0 = vrot.slane %v1540_v54, 5  ;;  %v2584_v3 = vld [vmem:[%s3212_s29 + $0xb8] sm:$0xf]  ;;  %v1568_v8 = vshll.u32 %v2582_v57, 16 }
  0x79   : > { %v1521_v53 = vsel %vm3246_vm4, %v1516_v42, %v1520_v35  ;;  %2767 = vmatprep.mubr.msk.bf16.mxu1 %vm811_vm1, %v2587_v48  ;;  %v1553_v2 = vrot.slane %v1551_v56, 4  ;;  %v2585_v6 = vld [vmem:[%s3212_s29 + $0xbc] sm:$0x1]  ;;  %v1574_v10 = vshll.u32 %v2583_v62, 16  ;;  %v1579_v11 = vshrl.u32 %v2584_v3, 16 }
  0x7a   : > { %2758 = vmatmul.mubr.msk.bf16.vlgmr.msra.gmra.mxu0 %vm811_vm1, %v2901_v1  ;;  %v1535_v58 = vsel %vm3246_vm4, %v1530_v49, %v1534_v39  ;;  %v1548_v1 = vrot.slane %v1546_v55, 5  ;;  %v1562_v5 = vrot.slane %v1560_v61, 5  ;;  %v1543_v9 = vor.u32 %v1542_v0, %v1539_v59  ;;  %v2907_v17 = vld [vmem:[%s3212_s29 + $0x18] ss:$8 sps:$4 sm:$0xff]   ;;  %v2908_v33 = vld [vmem:[%s3212_s29 + $0x28] ss:$8 sps:$4 sm:$0xff]  }
  0x7b   : > { %2776 = vmatpush3.bf16.msra.mxu0 %v1738_v60  ;;  %2761 = vmatprep.mubr.msk.bf16.mxu0 %vm811_vm1, %v2904_v7  ;;  %v1554_v60 = vshll.u32 %v2580_v50, 16  ;;  %v2588_v63 = vcombine.low %v1521_v53, %v1535_v58  ;;  %v1565_v7 = vshrl.u32 %v2582_v57, 16  ;;  %v1582_v12 = vshll.u32 %v2584_v3, 16  ;;  %v2601_v25 = vld [vmem:[%s3212_s29 + $0x38] sm:$0xf] }
  0x7c   : > { %2816 = vmatprep.subr.msk.bf16.mxu0 %vm824_vm0, %v2642_v40  ;;  %v1570_v15 = vrot.slane %v1568_v8, 5  ;;  %v1588_v16 = vshll.u32 %v2585_v6, 16  ;;  %v1544_v18 = vrot.slane %v1543_v9, 4  ;;  %v1576_v19 = vrot.slane %v1574_v10, 5  ;;  %v1702_v26 = vld [vmem:[%s3354_s15] sm:$0xf] }
  0x7d   : > { %v1556_v4 = vrot.slane %v1554_v60, 5  ;;  %v1567_v14 = vrot.slane %v1565_v7, 4  ;;  %v1581_v20 = vrot.slane %v1579_v11, 4  ;;  %v1584_v21 = vrot.slane %v1582_v12, 5  ;;  %v3360_v29 = vld [vmem:[%s3354_s15] sm:$0xf] }
  0x7e   : > { %v1590_v24 = vrot.slane %v1588_v16, 5  ;;  %v1549_v27 = vsel %vm3246_vm4, %v1544_v18, %v1548_v1  ;;  %v2088_v30 = vsel %vm824_vm0, %v2642_v40, 0  ;;  %v2048_v37 = vshrl.u32 %v3360_v29, 16  ;;  %v2628_v40 = vld [vmem:[%s3212_s29 + $0x8] sm:$0xf] }
  0x7f   : > { %2768 = vmatmul.mubr.msk.bf16.vlgmr.msra.gmra.mxu1 %vm811_vm1, %v2588_v63  ;;  %v1557_v13 = vor.u32 %v1556_v4, %v1553_v2  ;;  %v1571_v23 = vor.u32 %v1570_v15, %v1567_v14  ;;  %v1585_v28 = vor.u32 %v1584_v21, %v1581_v20  ;;  %v2051_v38 = vshll.u32 %v3360_v29, 16  ;;  %v2629_v42 = vld [vmem:[%s3212_s29 + $0xc] sm:$0x1]  ;;  %v2631_v45 = vld [vmem:[%s3212_s29 + $0x14] sm:$0x1] }
  0x80   : > { %2786 = vmatpush3.bf16.msra.mxu1 %v1858_v44  ;;  %v2606_v41 = vcombine.low %v2601_v25, %v1702_v26  ;;  %v1950_v47 = vshrl.u32 %v2628_v40, 16  ;;  %v1953_v48 = vshll.u32 %v2628_v40, 16  ;;  %v1959_v49 = vshll.u32 %v2629_v42, 16  ;;  %v2632_v54 = vld [vmem:[%s3212_s29 + $0x18] sm:$0xf] }
  0x81   : > { %v1558_v22 = vrot.slane %v1557_v13, 4  ;;  %v1572_v32 = vrot.slane %v1571_v23, 4  ;;  %v1586_v35 = vrot.slane %v1585_v28, 4  ;;  %v1973_v53 = vshll.u32 %v2631_v45, 16  ;;  %v2633_v58 = vld [vmem:[%s3212_s29 + $0x1c] sm:$0x1] }
  0x82   : > { %2762 = vmatmul.mubr.msk.bf16.gmra.mxu0 %vm811_vm1, %v2905_v36  ;;  %v2909_v36 = vld [vmem:[%s3212_s29 + $0x48] ss:$8 sps:$4 sm:$0xff]   ;;  %v1952_v55 = vrot.slane %v1950_v47, 4  ;;  %v1955_v56 = vrot.slane %v1953_v48, 5  ;;  %v1961_v57 = vrot.slane %v1959_v49, 5  ;;  %v1978_v59 = vshrl.u32 %v2632_v54, 16 }
  0x83   : > { %2777 = vmatprep.mubr.msk.bf16.mxu0 %vm811_vm1, %v2906_v43  ;;  %v1563_v31 = vsel %vm3246_vm4, %v1558_v22, %v1562_v5  ;;  %v1577_v39 = vsel %vm3246_vm4, %v1572_v32, %v1576_v19  ;;  %v2630_v43 = vld [vmem:[%s3212_s29 + $0x10] sm:$0xf]  ;;  %v1591_v44 = vsel %vm3246_vm4, %v1586_v35, %v1590_v24  ;;  %v1975_v62 = vrot.slane %v1973_v53, 5  ;;  %v2634_v63 = vld [vmem:[%s3212_s29 + $0x20] sm:$0xf] }
  0x84   : > { %v2589_v34 = vcombine.low %v1549_v27, %v1563_v31  ;;  %v2590_v50 = vcombine.low %v1577_v39, %v1591_v44  ;;  %v1964_v51 = vshrl.u32 %v2630_v43, 16  ;;  %v1967_v52 = vshll.u32 %v2630_v43, 16  ;;  %v2635_v2 = vld [vmem:[%s3212_s29 + $0x24] sm:$0x1]  ;;  %v2910_v6 = vld [vmem:[%s3212_s29 + $0x58] ss:$8 sps:$4 sm:$0xff]  }
  0x85   : > { %v1981_v0 = vshll.u32 %v2632_v54, 16  ;;  %v1956_v1 = vor.u32 %v1955_v56, %v1952_v55  ;;  %v1980_v3 = vrot.slane %v1978_v59, 4  ;;  %v1987_v4 = vshll.u32 %v2633_v58, 16  ;;  %v2911_v19 = vld [vmem:[%s3212_s29 + $0x68] ss:$8 sps:$4 sm:$0xff]  }
  0x86   : > { %2771 = vmatprep.mubr.msk.bf16.mxu1 %vm811_vm1, %v2589_v34  ;;  %v1966_v60 = vrot.slane %v1964_v51, 4  ;;  %v1969_v61 = vrot.slane %v1967_v52, 5  ;;  %v1992_v5 = vshrl.u32 %v2634_v63, 16  ;;  %v1995_v9 = vshll.u32 %v2634_v63, 16  ;;  %v2617_v21 = vld [vmem:[%s3212_s29 + $0x78] sm:$0xf] }
  0x87   : > { %2772 = vmatmul.mubr.msk.bf16.gmra.mxu1 %vm811_vm1, %v2590_v50  ;;  %v1983_v8 = vrot.slane %v1981_v0, 5  ;;  %v2001_v10 = vshll.u32 %v2635_v2, 16  ;;  %v1957_v11 = vrot.slane %v1956_v1, 4  ;;  %v1989_v12 = vrot.slane %v1987_v4, 5  ;;  %v2618_v22 = vld [vmem:[%s3354_s15 + $0x8] sm:$0xf] }
  0x88   : > { %2787 = vmatprep.mubr.msk.bf16.mxu1 %vm811_vm1, %v2909_v36  ;;  %v1970_v7 = vor.u32 %v1969_v61, %v1966_v60  ;;  %v1994_v13 = vrot.slane %v1992_v5, 4  ;;  %v2050_v14 = vrot.slane %v2048_v37, 4  ;;  %v2636_v23 = vld [vmem:[%s3212_s29 + $0x28] sm:$0xf]  ;;  %v2623_v27 = vcombine.low %v2617_v21, %v2618_v22  ;;  %v2637_v28 = vld [vmem:[%s3212_s29 + $0x2c] sm:$0x1] }
  0x89   : > { %v1984_v16 = vor.u32 %v1983_v8, %v1980_v3  ;;  %v2003_v18 = vrot.slane %v2001_v10, 5  ;;  %v1962_v20 = vsel %vm3246_vm4, %v1957_v11, %v1961_v57  ;;  %v2639_v32 = vld [vmem:[%s3212_s29 + $0x34] sm:$0x1]  ;;  %v2009_v34 = vshll.u32 %v2636_v23, 16  ;;  %v2640_v40 = vld [vmem:[%s3212_s29 + $0x38] sm:$0xf] }
  0x8a   : > { %2778 = vmatmul.mubr.msk.bf16.vlgmr.msra.gmra.mxu0 %vm811_vm1, %v2907_v17  ;;  %v1971_v15 = vrot.slane %v1970_v7, 4  ;;  %v1997_v17 = vrot.slane %v1995_v9, 5  ;;  %v2015_v35 = vshll.u32 %v2637_v28, 16  ;;  %v2029_v45 = vshll.u32 %v2639_v32, 16  ;;  %v2641_v47 = vld [vmem:[%s3212_s29 + $0x3c] sm:$0x1] }
  0x8b   : > { %2796 = vmatpush3.bf16.msra.mxu0 %v2088_v30  ;;  %2781 = vmatprep.mubr.msk.bf16.mxu0 %vm811_vm1, %v2908_v33  ;;  %v1985_v25 = vrot.slane %v1984_v16, 4  ;;  %v2638_v30 = vld [vmem:[%s3212_s29 + $0x30] sm:$0xf]  ;;  %v2006_v33 = vshrl.u32 %v2636_v23, 16  ;;  %v2011_v43 = vrot.slane %v2009_v34, 5  ;;  %v2034_v52 = vshrl.u32 %v2640_v40, 16 }
  0x8c   : > { %v1976_v24 = vsel %vm3246_vm4, %v1971_v15, %v1975_v62  ;;  %v1998_v26 = vor.u32 %v1997_v17, %v1994_v13  ;;  %v2020_v39 = vshrl.u32 %v2638_v30, 16  ;;  %v2017_v44 = vrot.slane %v2015_v35, 5  ;;  %v1948_v51 = vld [vmem:[%s3354_s15 + $0x4] sm:$0x1] }
  0x8d   : > { %v2643_v31 = vcombine.low %v1962_v20, %v1976_v24  ;;  %v1990_v36 = vsel %vm3246_vm4, %v1985_v25, %v1989_v12  ;;  %v2008_v42 = vrot.slane %v2006_v33, 4  ;;  %v2031_v55 = vrot.slane %v2029_v45, 5 }
  0x8e   : > { %v1999_v37 = vrot.slane %v1998_v26, 4  ;;  %v2022_v49 = vrot.slane %v2020_v39, 4  ;;  %v2037_v56 = vshll.u32 %v2640_v40, 16  ;;  %v2036_v58 = vrot.slane %v2034_v52, 4 }
  0x8f   : > { %2788 = vmatmul.mubr.msk.bf16.vlgmr.msra.gmra.mxu1 %vm811_vm1, %v2910_v6  ;;  %v2012_v54 = vor.u32 %v2011_v43, %v2008_v42  ;;  %v2043_v59 = vshll.u32 %v2641_v47, 16  ;;  %v2053_v60 = vrot.slane %v2051_v38, 5  ;;  %v2057_v63 = vshll.u32 %v1948_v51, 16 }
  0x90   : > { %2791 = vmatprep.mubr.msk.bf16.mxu1 %vm811_vm1, %v2911_v19  ;;  %v2004_v48 = vsel %vm3246_vm4, %v1999_v37, %v2003_v18  ;;  %v2039_v62 = vrot.slane %v2037_v56, 5  ;;  %vm2248_vm5 = vcmask 27648   ;;  %vm2184_vm6 = vcmask 24576  }
  0x91   : > { %v2644_v53 = vcombine.low %v1990_v36, %v2004_v48  ;;  %v2013_v61 = vrot.slane %v2012_v54, 4  ;;  %v2054_v1 = vor.u32 %v2053_v60, %v2050_v14  ;;  %v2045_v4 = vrot.slane %v2043_v59, 5 }
  0x92   : > { %2782 = vmatmul.mubr.msk.bf16.gmra.mxu0 %vm811_vm1, %v2606_v41  ;;  %v2023_v41 = vshll.u32 %v2638_v30, 16  ;;  %v2040_v3 = vor.u32 %v2039_v62, %v2036_v58  ;;  %v2059_v5 = vrot.slane %v2057_v63, 5 }
  0x93   : > { %2797 = vmatprep.mubr.msk.bf16.mxu0 %vm811_vm1, %v2643_v31  ;;  %v2018_v2 = vsel %vm3246_vm4, %v2013_v61, %v2017_v44  ;;  %v2055_v29 = vrot.slane %v2054_v1, 4 }
  0x94   : > { %v2025_v50 = vrot.slane %v2023_v41, 5  ;;  %v2041_v7 = vrot.slane %v2040_v3, 4 }
  0x95   : > { %v2060_v8 = vsel %vm3246_vm4, %v2055_v29, %v2059_v5 }
  0x96   : > { %v2026_v57 = vor.u32 %v2025_v50, %v2022_v49  ;;  %v2046_v9 = vsel %vm3246_vm4, %v2041_v7, %v2045_v4 }
  0x97   : > { %2792 = vmatmul.mubr.msk.bf16.gmra.mxu1 %vm811_vm1, %v2623_v27  ;;  %v2646_v10 = vcombine.low %v2046_v9, %v2060_v8 }
  0x98   : > { %v2027_v0 = vrot.slane %v2026_v57, 4 }
  0x9a   : > { %2798 = vmatmul.mubr.msk.bf16.vlgmr.msra.gmra.mxu0 %vm811_vm1, %v2644_v53  ;;  %v2032_v6 = vsel %vm3246_vm4, %v2027_v0, %v2031_v55 }
  0x9b   : > { %v2645_v38 = vcombine.low %v2018_v2, %v2032_v6 }
  0x9d   : > { %2801 = vmatprep.mubr.msk.bf16.mxu0 %vm811_vm1, %v2645_v38 }
  0xa2   : > { %2802 = vmatmul.mubr.msk.bf16.gmra.mxu0 %vm811_vm1, %v2646_v10 }
 0x117   : > { %v2723_v11 = vpop.f32.mrf.mxu1  ;;  %v2719_v13 = vpop.f32.mrf.mxu0 }
 0x119   : > { %v878_v12 = vpop.f32.mrf.mxu1  ;;  %v862_v16 = vpop.f32.mrf.mxu0 }
 0x11b   : > { %v3423_v14 = vpop.f32.mrf.mxu1  ;;  %v2720_v19 = vpop.f32.mrf.mxu0 }
 0x11d   : > { %v3425_v15 = vpop.f32.mrf.mxu1  ;;  %v865_v22 = vpop.f32.mrf.mxu0 }
 0x11f   : > { %v2729_v17 = vpop.f32.mrf.mxu1 }
 0x120   : > { %v971_v53 = vadd.f32 %v2729_v17, %v2719_v13 }
 0x121   : > { %v962_v18 = vpop.f32.mrf.mxu1 }
 0x122   : > { %v963_v56 = vadd.f32 %v962_v18, %v862_v16 }
 0x123   : > { %v2730_v20 = vpop.f32.mrf.mxu1 }
 0x124   : > { %v974_v61 = vadd.f32 %v2730_v20, %v2720_v19 }
 0x125   : > { %v965_v21 = vpop.f32.mrf.mxu1 }
 0x126   : > { %v966_v63 = vadd.f32 %v965_v21, %v865_v22 }
 0x127   : > { %v2733_v23 = vpop.f32.mrf.mxu1 }
 0x128   : > { %v2739_v46 = vpop.f32.mrf.mxu0  ;;  %v987_v6 = vadd.f32 %v2733_v23, %v2723_v11 }
 0x129   : > { %v978_v24 = vpop.f32.mrf.mxu1  ;;  %v1220_v58 = vadd.f32 %v2739_v46, %v971_v53 }
 0x12a   : > { %v1187_v25 = vpop.f32.mrf.mxu0  ;;  %v979_v10 = vadd.f32 %v978_v24, %v878_v12 }
 0x12b   : > { %v2734_v26 = vpop.f32.mrf.mxu1  ;;  %v1218_v62 = vadd.f32 %v1187_v25, %v963_v56 }
 0x12c   : > { %v2740_v27 = vpop.f32.mrf.mxu0  ;;  %v990_v21 = vadd.f32 %v2734_v26, %v3423_v14 }
 0x12d   : > { %v981_v28 = vpop.f32.mrf.mxu1  ;;  %v1221_v5 = vadd.f32 %v2740_v27, %v974_v61 }
 0x12e   : > { %v1190_v31 = vpop.f32.mrf.mxu0  ;;  %v982_v23 = vadd.f32 %v981_v28, %v3425_v15 }
 0x12f   : > { %v2749_v30 = vpop.f32.mrf.mxu1  ;;  %v1219_v29 = vadd.f32 %v1190_v31, %v966_v63 }
 0x130   : > { %v1339_v0 = vadd.f32 %v2749_v30, %v1220_v58 }
 0x131   : > { %v1306_v32 = vpop.f32.mrf.mxu1 }
 0x132   : > { %v2743_v34 = vpop.f32.mrf.mxu0  ;;  %v1337_v2 = vadd.f32 %v1306_v32, %v1218_v62 }
 0x133   : > { %v2750_v33 = vpop.f32.mrf.mxu1  ;;  %v1224_v20 = vadd.f32 %v2743_v34, %v987_v6 }
 0x134   : > { %v1203_v36 = vpop.f32.mrf.mxu0  ;;  %v1340_v9 = vadd.f32 %v2750_v33, %v1221_v5 }
 0x135   : > { %v1309_v35 = vpop.f32.mrf.mxu1  ;;  %v1222_v30 = vadd.f32 %v1203_v36, %v979_v10 }
 0x136   : > { %v2744_v39 = vpop.f32.mrf.mxu0  ;;  %v1338_v16 = vadd.f32 %v1309_v35, %v1219_v29 }
 0x137   : > { %v2753_v37 = vpop.f32.mrf.mxu1  ;;  %v1225_v33 = vadd.f32 %v2744_v39, %v990_v21 }
 0x138   : > { %v3427_v40 = vpop.f32.mrf.mxu0  ;;  %v1343_v27 = vadd.f32 %v2753_v37, %v1224_v20 }
 0x139   : > { %v1322_v41 = vpop.f32.mrf.mxu1  ;;  %v1223_v15 = vadd.f32 %v3427_v40, %v982_v23 }
 0x13a   : > { %v2759_v42 = vpop.f32.mrf.mxu0  ;;  %v1341_v35 = vadd.f32 %v1322_v41, %v1222_v30 }
 0x13b   : > { %v3429_v43 = vpop.f32.mrf.mxu1  ;;  %v1458_v38 = vadd.f32 %v2759_v42, %v1339_v0 }
 0x13c   : > { %v1425_v44 = vpop.f32.mrf.mxu0  ;;  %v1344_v36 = vadd.f32 %v3429_v43, %v1225_v33 }
 0x13d   : > { %v3431_v47 = vpop.f32.mrf.mxu1  ;;  %v1456_v13 = vadd.f32 %v1425_v44, %v1337_v2 }
 0x13e   : > { %v2760_v45 = vpop.f32.mrf.mxu0 }
 0x13f   : > { %v2769_v50 = vpop.f32.mrf.mxu1  ;;  %v1459_v25 = vadd.f32 %v2760_v45, %v1340_v9 }
 0x140   : > { %v1428_v48 = vpop.f32.mrf.mxu0  ;;  %v1688_v17 = vadd.f32 %v2769_v50, %v1458_v38 }
 0x141   : > { %v1655_v52 = vpop.f32.mrf.mxu1  ;;  %v1457_v12 = vadd.f32 %v1428_v48, %v1338_v16  ;;  %v1342_v48 = vadd.f32 %v3431_v47, %v1223_v15 }
 0x142   : > { %v2763_v49 = vpop.f32.mrf.mxu0  ;;  %v1686_v22 = vadd.f32 %v1655_v52, %v1456_v13 }
 0x143   : > { %v2770_v55 = vpop.f32.mrf.mxu1  ;;  %v1462_v28 = vadd.f32 %v2763_v49, %v1343_v27 }
 0x144   : > { %v3433_v51 = vpop.f32.mrf.mxu0  ;;  %v1689_v34 = vadd.f32 %v2770_v55, %v1459_v25 }
 0x145   : > { %v1658_v60 = vpop.f32.mrf.mxu1  ;;  %v1460_v41 = vadd.f32 %v3433_v51, %v1341_v35 }
 0x146   : > { %v3435_v54 = vpop.f32.mrf.mxu0  ;;  %v1687_v26 = vadd.f32 %v1658_v60, %v1457_v12 }
 0x147   : > { %v2773_v4 = vpop.f32.mrf.mxu1 }
 0x148   : > { %v3437_v57 = vpop.f32.mrf.mxu0  ;;  %v1692_v53 = vadd.f32 %v2773_v4, %v1462_v28 }
 0x149   : > { %v1671_v8 = vpop.f32.mrf.mxu1  ;;  %v1461_v62 = vadd.f32 %v3437_v57, %v1342_v48 }
 0x14a   : > { %v2779_v59 = vpop.f32.mrf.mxu0  ;;  %v1690_v47 = vadd.f32 %v1671_v8, %v1460_v41 }
 0x14b   : > { %v2774_v19 = vpop.f32.mrf.mxu1  ;;  %v1807_v24 = vadd.f32 %v2779_v59, %v1688_v17  ;;  %v1463_v59 = vadd.f32 %v3435_v54, %v1344_v36 }
 0x14c   : > { %v1774_v1 = vpop.f32.mrf.mxu0 }
 0x14d   : > { %v1674_v11 = vpop.f32.mrf.mxu1  ;;  %v1805_v14 = vadd.f32 %v1774_v1, %v1686_v22  ;;  %v1693_v0 = vadd.f32 %v2774_v19, %v1463_v59 }
 0x14e   : > { %v2780_v3 = vpop.f32.mrf.mxu0 }
 0x14f   : > { %v2789_v32 = vpop.f32.mrf.mxu1  ;;  %v1808_v52 = vadd.f32 %v2780_v3, %v1689_v34  ;;  %v1691_v3 = vadd.f32 %v1674_v11, %v1461_v62 }
 0x150   : > { %v1777_v7 = vpop.f32.mrf.mxu0  ;;  %v1927_v44 = vadd.f32 %v2789_v32, %v1807_v24 }
 0x151   : > { %v1894_v50 = vpop.f32.mrf.mxu1  ;;  %v1806_v55 = vadd.f32 %v1777_v7, %v1687_v26 }
 0x152   : > { %v2783_v18 = vpop.f32.mrf.mxu0  ;;  %v1925_v37 = vadd.f32 %v1894_v50, %v1805_v14 }
 0x153   : > { %v2790_v45 = vpop.f32.mrf.mxu1  ;;  %v1811_v63 = vadd.f32 %v2783_v18, %v1692_v53 }
 0x154   : > { %v1790_v46 = vpop.f32.mrf.mxu0  ;;  %v1928_v43 = vadd.f32 %v2790_v45, %v1808_v52 }
 0x155   : > { %v1897_v58 = vpop.f32.mrf.mxu1  ;;  %v1809_v29 = vadd.f32 %v1790_v46, %v1690_v47 }
 0x156   : > { %v2784_v31 = vpop.f32.mrf.mxu0  ;;  %v1926_v61 = vadd.f32 %v1897_v58, %v1806_v55 }
 0x157   : > { %v2793_v51 = vpop.f32.mrf.mxu1  ;;  %v1812_v9 = vadd.f32 %v2784_v31, %v1693_v0 }
 0x158   : > { %v1793_v42 = vpop.f32.mrf.mxu0  ;;  %v1931_v6 = vadd.f32 %v2793_v51, %v1811_v63 }
 0x159   : > { %v1910_v2 = vpop.f32.mrf.mxu1  ;;  %v1810_v21 = vadd.f32 %v1793_v42, %v1691_v3 }
 0x15a   : > { %v2799_v39 = vpop.f32.mrf.mxu0  ;;  %v1929_v20 = vadd.f32 %v1910_v2, %v1809_v29 }
 0x15b   : > { %v2157_v56 = vadd.f32 %v2799_v39, %v1927_v44  ;;  %v2794_v8 = vpop.f32.mrf.mxu1 }
 0x15c   : > { %v2124_v40 = vpop.f32.mrf.mxu0  ;;  %v1932_v11 = vadd.f32 %v2794_v8, %v1812_v9 }
 0x15d   : > { %v2664_v49 = vpack.c.bf16 %v2157_v56, %v2157_v56  ;;  %v2155_v60 = vadd.f32 %v2124_v40, %v1925_v37  ;;  %v2188_v57 = vmul.f32 %v2157_v56, %v2157_v56  ;;  %v1913_v23 = vpop.f32.mrf.mxu1  ;;  %v2166_v25 = vsel %vm811_vm1, %v2157_v56, 0.0 }
 0x15e   : > { %v2800_v54 = vpop.f32.mrf.mxu0  ;;  %v1930_v42 = vadd.f32 %v1913_v23, %v1810_v21 }
 0x15f   : > { %2251 = vst.msk [vmem:[%s3456_s27 + $0x8] sm:$0xf] %vm2248_vm5, %v2664_v49  ;;  %v2662_v1 = vpack.c.bf16 %v2155_v60, %v2155_v60  ;;  %v2158_v4 = vadd.f32 %v2800_v54, %v1928_v43  ;;  %v2186_v38 = vmul.f32 %v2155_v60, %v2155_v60  ;;  %v2163_v10 = vsel %vm811_vm1, %v2155_v60, 0.0 }
 0x160   : > { %v2127_v5 = vpop.f32.mrf.mxu0  ;;  %v2197_v31 = vsel %vm811_vm1, %v2188_v57, 0.0 }
 0x161   : > { %2249 = vst.msk [vmem:[%s3456_s27] sm:$0xf] %vm2248_vm5, %v2662_v1  ;;  %v2156_v7 = vadd.f32 %v2127_v5, %v1926_v61  ;;  %v2665_v13 = vpack.c.bf16 %v2158_v4, %v2158_v4  ;;  %v2194_v27 = vsel %vm811_vm1, %v2186_v38, 0.0  ;;  %v2189_v30 = vmul.f32 %v2158_v4, %v2158_v4 }
 0x162   : > { %v2803_v19 = vpop.f32.mrf.mxu0  ;;  %v2168_v34 = vsel %vm811_vm1, %v2158_v4, 0.0 }
 0x163   : > { %v2164_v16 = vsel %vm811_vm1, %v2156_v7, 0.0  ;;  %v2187_v17 = vmul.f32 %v2156_v7, %v2156_v7  ;;  %v2663_v18 = vpack.c.bf16 %v2156_v7, %v2156_v7  ;;  %2252 = vst.msk [vmem:[%s3456_s27 + $0xc] sm:$0xf] %vm2248_vm5, %v2665_v13  ;;  %v2161_v46 = vadd.f32 %v2803_v19, %v1931_v6 }
 0x164   : > { %v2165_v22 = vadd.f32 %v2164_v16, %v2163_v10  ;;  %v2140_v24 = vpop.f32.mrf.mxu0  ;;  %v2199_v28 = vsel %vm811_vm1, %v2189_v30, 0.0 }
 0x165   : > { %v2195_v12 = vsel %vm811_vm1, %v2187_v17, 0.0  ;;  %2250 = vst.msk [vmem:[%s3456_s27 + $0x4] sm:$0xf] %vm2248_vm5, %v2663_v18  ;;  %v2668_v35 = vpack.c.bf16 %v2161_v46, %v2161_v46  ;;  %v2159_v14 = vadd.f32 %v2140_v24, %v1929_v20  ;;  %v2192_v58 = vmul.f32 %v2161_v46, %v2161_v46 }
 0x166   : > { %v2167_v32 = vadd.f32 %v2166_v25, %v2165_v22  ;;  %v2196_v33 = vadd.f32 %v2195_v12, %v2194_v27  ;;  %v2804_v26 = vpop.f32.mrf.mxu0  ;;  %v2174_v49 = vsel %vm811_vm1, %v2161_v46, 0.0 }
 0x167   : > { %v2162_v15 = vadd.f32 %v2804_v26, %v1932_v11  ;;  %2255 = vst.msk [vmem:[%s3456_s27 + $0x18] sm:$0xf] %vm2248_vm5, %v2668_v35  ;;  %v2170_v36 = vsel %vm811_vm1, %v2159_v14, 0.0  ;;  %v2190_v37 = vmul.f32 %v2159_v14, %v2159_v14  ;;  %v2666_v45 = vpack.c.bf16 %v2159_v14, %v2159_v14 }
 0x168   : > { %v2198_v44 = vadd.f32 %v2197_v31, %v2196_v33  ;;  %v2169_v50 = vadd.f32 %v2168_v34, %v2167_v32  ;;  %v2143_v48 = vpop.f32.mrf.mxu0  ;;  %v2205_v63 = vsel %vm811_vm1, %v2192_v58, 0.0 }
 0x169   : > { %v2201_v39 = vsel %vm811_vm1, %v2190_v37, 0.0  ;;  %2253 = vst.msk [vmem:[%s3456_s27 + $0x10] sm:$0xf] %vm2248_vm5, %v2666_v45  ;;  %v2669_v41 = vpack.c.bf16 %v2162_v15, %v2162_v15  ;;  %v2160_v55 = vadd.f32 %v2143_v48, %v1930_v42  ;;  %v2193_v60 = vmul.f32 %v2162_v15, %v2162_v15 }
 0x16a   : > { %v2171_v52 = vadd.f32 %v2170_v36, %v2169_v50  ;;  %v2200_v53 = vadd.f32 %v2199_v28, %v2198_v44  ;;  %v2176_v0 = vsel %vm811_vm1, %v2162_v15, 0.0 }
 0x16b   : > { %2256 = vst.msk [vmem:[%s3456_s27 + $0x1c] sm:$0xf] %vm2248_vm5, %v2669_v41  ;;  %v2172_v59 = vsel %vm811_vm1, %v2160_v55, 0.0  ;;  %v2191_v40 = vmul.f32 %v2160_v55, %v2160_v55  ;;  %v2667_v43 = vpack.c.bf16 %v2160_v55, %v2160_v55  ;;  %v2207_v2 = vsel %vm811_vm1, %v2193_v60, 0.0 }
 0x16c   : > { %v2202_v56 = vadd.f32 %v2201_v39, %v2200_v53  ;;  %v2173_v47 = vadd.f32 %v2172_v59, %v2171_v52 }
 0x16d   : > { %v2203_v61 = vsel %vm811_vm1, %v2191_v40, 0.0  ;;  %2254 = vst.msk [vmem:[%s3456_s27 + $0x14] sm:$0xf] %vm2248_vm5, %v2667_v43 }
 0x16e   : > { %v2175_v51 = vadd.f32 %v2174_v49, %v2173_v47  ;;  %v2204_v62 = vadd.f32 %v2203_v61, %v2202_v56 }
 0x170   : > { %v2177_v54 = vadd.f32 %v2176_v0, %v2175_v51  ;;  %v2206_v1 = vadd.f32 %v2205_v63, %v2204_v62 }
 0x172   : > { %v2178_v3 = vrot.slane %v2177_v54, 4  ;;  %v2208_v4 = vadd.f32 %v2207_v2, %v2206_v1 }
 0x174   : > { %v2179_v5 = vadd.f32 %v2178_v3, %v2177_v54  ;;  %v2209_v6 = vrot.slane %v2208_v4, 4 }
 0x176   : > { %v2180_v29 = vrot.slane %v2179_v5, 2  ;;  %v2210_v38 = vadd.f32 %v2209_v6, %v2208_v4 }
 0x178   : > { %v2181_v7 = vadd.f32 %v2180_v29, %v2179_v5  ;;  %v2211_v8 = vrot.slane %v2210_v38, 2 }
 0x17a   : > { %v2182_v9 = vrot.slane %v2181_v7, 1  ;;  %v2212_v57 = vadd.f32 %v2211_v8, %v2210_v38 }
 0x17c   : > { %v2183_v10 = vadd.f32 %v2182_v9, %v2181_v7  ;;  %v2213_v13 = vrot.slane %v2212_v57, 1 }
 0x17e   : > { %2185 = vst.msk [vmem:[%s769_s5] sm:$0x1] %vm2184_vm6, %v2183_v10  ;;  %v2214_v16 = vadd.f32 %v2213_v13, %v2212_v57 }
 0x180   : > { %2215 = vst.msk [vmem:[%s769_s5 + $0x1] sm:$0x1] %vm2184_vm6, %v2214_v16 }
 0x181 PF: > { %s15_s19 = sadd.s32 1, %s2966_s19   ;;  %s3518_s15 = smov %s2954_s16 }
 0x182   : > { %p12_p11 = scmp.ge.s32.totalorder %s15_s19, 4   ;;  %s3519_s16 = smov %s3036_s24 }
 0x183   : > { %s3520_s17 = smov %s2962_s18  ;;  %s3521_s18 = smov %s3523_s20 }
 0x184   :  { %14 = sbr.rel (!%p12_p11) target bundleno = 3 (0x3), region = 240 }

</bundles_post_ra>
